<compile_context>
chip_gen: v7x
topology: tpu7x:2x2x1
jax: 0.10.0
libtpu: 0.0.40
codegen_flags: <defaults>
</compile_context>

<pallas_src>
import functools

import jax
import jax.numpy as jnp
from jax import lax
from jax.experimental import pallas as pl
from jax.experimental.pallas import tpu as pltpu


def _round_up(v, m):
    return (v + m - 1) // m * m


def _cdiv(a, b):
    return (a + b - 1) // b


def _pick_tile_m(mo, n_imgs):
    """Extended-output rows per grid step (multiple of 16, >=2 total grid steps if possible)."""
    tm = min(512, _round_up(mo, 16))
    if n_imgs * _cdiv(mo, tm) < 2 and mo > 16:   # keep both v7x TensorCores busy
        tm = max(16, _round_up(_cdiv(mo, 2), 16))
    return tm


# ---------------- fused Pallas kernel ----------------

def _adown_kernel(ef_ref, ff_ref, gf_ref, kf_ref,
                  q00_ref, q01_ref, q10_ref, q11_ref,
                  w1_ref, b1_ref, w2_ref, b2_ref,
                  o_ref, acc_ref, *, tm, wp, ext):
    # ef/ff/gf/kf: per-image resident parity planes of the padded branch-1 input, (MPAD, Cin) bf16
    # q**:         pool-tap planes, streamed per tile, (TM, Cin) bf16
    # w1: (9, Cin, Co1) bf16 (BN scale folded)   w2: (Cin, Co2) bf16 (BN scale folded)
    # b1/b2: (1, Co*) f32     o: (TM, Co1+Co2) bf16     acc: (TM, Co1) f32 scratch
    t0 = pl.multiple_of(pl.program_id(1) * tm, 16)   # first extended row of this tile

    # Aligned loads of an extended row window; all 9 conv taps are static row shifts of these.
    e = ef_ref[pl.ds(t0, ext), :]        # even rows / even cols of padded x1
    f = ff_ref[pl.ds(t0, ext), :]        # even rows / odd  cols
    g = gf_ref[pl.ds(t0, ext), :]        # odd  rows / even cols
    k = kf_ref[pl.ds(t0, tm), :]         # odd  rows / odd  cols (needs no shift)

    taps = (e[0:tm],                 # (dh=0, dw=0)
            f[0:tm],                 # (0, 1)
            e[1:tm + 1],             # (0, 2)
            g[0:tm],                 # (1, 0)
            k,                       # (1, 1)
            g[1:tm + 1],             # (1, 2)
            e[wp:wp + tm],           # (2, 0)
            f[wp:wp + tm],           # (2, 1)
            e[wp + 1:wp + 1 + tm])   # (2, 2)

    # ---- branch 1: 3x3 stride-2 conv (scale folded into weights) = 9 accumulated MXU matmuls
    acc_ref[...] = jnp.dot(taps[0], w1_ref[0], preferred_element_type=jnp.float32)
    for t in range(1, 9):
        acc_ref[...] += jnp.dot(taps[t], w1_ref[t], preferred_element_type=jnp.float32)
    y1 = acc_ref[...] + b1_ref[...]          # folded-BN bias (f32)
    y1 = y1 * jax.nn.sigmoid(y1)             # SiLU (EUP)

    # ---- branch 2: 2x2 max-pool (VPU) + 1x1 conv (MXU) + bias + SiLU
    xm = jnp.maximum(jnp.maximum(q00_ref[...], q01_ref[...]),
                     jnp.maximum(q10_ref[...], q11_ref[...]))
    y2 = jnp.dot(xm, w2_ref[...], preferred_element_type=jnp.float32) + b2_ref[...]
    y2 = y2 * jax.nn.sigmoid(y2)

    # single lane-dense bf16 store of the fused [branch1 | branch2] block
    o_ref[...] = jnp.concatenate([y1, y2], axis=-1).astype(o_ref.dtype)


# ---------------- NHWC core (transpose-free fast path) ----------------

def adown_forward_nhwc(x, params, out_dtype=jnp.bfloat16):
    """ADown forward. x: (N, H, W, c1); returns (N, H//2, W//2, c2) in `out_dtype`."""
    w1, s1, b1, w2, s2, b2 = params          # w1: (3,3,Cin,Co1) HWIO; w2: (1,1,Cin,Co2)
    N, H, W, C = x.shape
    assert C % 2 == 0 and H % 2 == 0 and W % 2 == 0
    cin = C // 2
    ho, wo = H // 2, W // 2
    wp = wo + 1                              # extended row width (one throw-away column)
    co1, co2 = w1.shape[-1], w2.shape[-1]
    couts = co1 + co2

    x1 = x[..., :cin].astype(jnp.bfloat16)
    x2 = x[..., cin:].astype(jnp.bfloat16)
    xp = jnp.pad(x1, ((0, 0), (1, 1), (1, 1), (0, 0)))         # (N, H+2, W+2, Cin)

    mo = ho * wp                             # extended-output rows per image
    tm = _pick_tile_m(mo, N)
    mop = _round_up(mo, tm)
    gt = mop // tm
    ext = tm + _round_up(wp + 1, 8)          # row window per step (covers +1/+wp/+wp+1 shifts)
    mpad = mop - tm + ext                    # resident plane rows (>= natural (ho+1)*wp)

    # --- branch-1 feed: parity planes of the padded input, flattened to width-wp rows.
    def plane(a):                            # (N, ho+1, wp, Cin) -> (N, mpad, Cin)
        a = a.reshape(N, (ho + 1) * wp, cin)
        return jnp.pad(a, ((0, 0), (0, mpad - (ho + 1) * wp), (0, 0)))

    ef = plane(xp[:, 0::2, 0::2, :])         # even rows, even cols
    ff = plane(xp[:, 0::2, 1::2, :])         # even rows, odd  cols
    gf = plane(xp[:, 1::2, 0::2, :])         # odd  rows, even cols
    kf = plane(xp[:, 1::2, 1::2, :])         # odd  rows, odd  cols

    # --- branch-2 feed: the 4 parity planes of x2 (== 2x2 pool taps), extended row layout.
    def pool_plane(r, c):
        q = x2[:, r::2, c::2, :]                               # (N, ho, wo, Cin)
        q = jnp.pad(q, ((0, 0), (0, 0), (0, 1), (0, 0)))       # width wo -> wp
        q = q.reshape(N, mo, cin)
        return jnp.pad(q, ((0, 0), (0, mop - mo), (0, 0)))

    q00, q01, q10, q11 = [pool_plane(r, c) for r in (0, 1) for c in (0, 1)]

    # --- fold eval-mode BatchNorm scale into the (bf16) conv weights; bias stays in the epilogue.
    w1m = (w1 * s1.reshape(1, 1, 1, co1)).reshape(9, cin, co1).astype(jnp.bfloat16)
    w2m = (w2.reshape(cin, co2) * s2).astype(jnp.bfloat16)
    b1m = b1.astype(jnp.float32)
    b2m = b2.astype(jnp.float32)

    # --- tight VMEM budget: resident planes + double-buffered tiles + weights + temporaries.
    need = (4 * mpad * cin * 2 * 2
            + (4 * tm * cin * 2 + tm * couts * 2) * 2
            + (9 * cin * co1 + cin * co2) * 2 + 2 * couts * 4
            + tm * co1 * 4
            + 3 * ext * cin * 2 + 12 * tm * cin * 2
            + 3 * tm * couts * 4)
    vmem_limit = int(min(max(need * 3 // 2, 8 << 20), max(32 << 20, need * 5 // 4)))

    plane_spec = pl.BlockSpec((None, mpad, cin), lambda n, t: (n, 0, 0))   # per-image resident
    tile_spec = pl.BlockSpec((None, tm, cin), lambda n, t: (n, t, 0))      # streamed per step

    kernel = functools.partial(_adown_kernel, tm=tm, wp=wp, ext=ext)
    out = pl.pallas_call(
        kernel,
        out_shape=jax.ShapeDtypeStruct((N, mop, couts), out_dtype),
        grid=(N, gt),
        in_specs=[
            plane_spec, plane_spec, plane_spec, plane_spec,        # E, F, G, K conv planes
            tile_spec, tile_spec, tile_spec, tile_spec,            # pool taps
            pl.BlockSpec((9, cin, co1), lambda n, t: (0, 0, 0)),   # folded 3x3 weight (resident)
            pl.BlockSpec((1, co1), lambda n, t: (0, 0)),           # BN bias 1 (resident)
            pl.BlockSpec((cin, co2), lambda n, t: (0, 0)),         # folded 1x1 weight (resident)
            pl.BlockSpec((1, co2), lambda n, t: (0, 0)),           # BN bias 2 (resident)
        ],
        out_specs=pl.BlockSpec((None, tm, couts), lambda n, t: (n, t, 0)),
        scratch_shapes=[pltpu.VMEM((tm, co1), jnp.float32)],
        compiler_params=pltpu.CompilerParams(
            dimension_semantics=("parallel", "parallel"),          # megacore-shardable on v7x
            vmem_limit_bytes=vmem_limit,
        ),
    )(ef, ff, gf, kf, q00, q01, q10, q11, w1m, b1m, w2m, b2m)

    # drop padded rows and the throw-away column of the extended layout
    y = out[:, :mo, :].reshape(N, ho, wp, couts)[:, :, :wo, :]
    return y


# ---------------- NCHW wrapper (PyTorch-spec compatibility) ----------------

def adown_forward(x_nchw, params, out_dtype=jnp.bfloat16):
    """Spec-compatible NCHW entry.  In an NHWC model call `adown_forward_nhwc` directly and
    skip both transpose passes (they are pure XLA glue, not part of the kernel)."""
    x = jnp.transpose(x_nchw, (0, 2, 3, 1))
    y = adown_forward_nhwc(x, params, out_dtype=out_dtype)
    return jnp.transpose(y, (0, 3, 1, 2))


# ---------------- deterministic synthetic parameters ----------------

def init_params(key, c1, c2, eps=1e-3):
    """Conv weights in HWIO + folded (eval-mode) BatchNorm scale/bias."""
    ch, co = c1 // 2, c2 // 2
    k1, k2, k3, k4 = jax.random.split(key, 4)
    w1 = 0.1 * jax.random.normal(k1, (3, 3, ch, co), jnp.float32)
    w2 = 0.1 * jax.random.normal(k2, (1, 1, ch, co), jnp.float32)

    def bn(k, c):
        kg, kb, km, kv = jax.random.split(k, 4)
        gamma = 1.0 + 0.1 * jax.random.normal(kg, (c,), jnp.float32)
        beta = 0.1 * jax.random.normal(kb, (c,), jnp.float32)
        mean = 0.1 * jax.random.normal(km, (c,), jnp.float32)
        var = jnp.abs(jax.random.normal(kv, (c,), jnp.float32)) + 0.5
        scale = gamma / jnp.sqrt(var + eps)
        bias = beta - mean * scale
        return scale.reshape(1, c), bias.reshape(1, c)

    s1, b1 = bn(k3, co)
    s2, b2 = bn(k4, co)
    return w1, s1, b1, w2, s2, b2


# ---------------- pure-JAX f32 reference (correctness check) ----------------

def ref_forward(x_nchw, params):
    w1, s1, b1, w2, s2, b2 = params
    x = jnp.transpose(x_nchw, (0, 2, 3, 1))
    cin = x.shape[-1] // 2
    x1, x2 = x[..., :cin], x[..., cin:]
    dn = ('NHWC', 'HWIO', 'NHWC')
    y1 = lax.conv_general_dilated(x1, w1, (2, 2), ((1, 1), (1, 1)), dimension_numbers=dn)
    y1 = y1 * s1 + b1
    y1 = y1 * jax.nn.sigmoid(y1)
    x2p = lax.reduce_window(x2, -jnp.inf, lax.max, (1, 2, 2, 1), (1, 2, 2, 1), 'VALID')
    y2 = lax.conv_general_dilated(x2p, w2, (1, 1), 'VALID', dimension_numbers=dn)
    y2 = y2 * s2 + b2
    y2 = y2 * jax.nn.sigmoid(y2)
    y = jnp.concatenate([y1, y2], axis=-1)
    return jnp.transpose(y, (0, 3, 1, 2))


if __name__ == "__main__":
    key = jax.random.PRNGKey(0)
    kx, kp = jax.random.split(key)

    N, c1, H, W = 2, 4, 16, 16
    c2 = 8
    x = jax.random.normal(kx, (N, c1, H, W), jnp.float32)
    params = init_params(kp, c1, c2)

    out = jax.jit(adown_forward)(x, params)
    out = jax.block_until_ready(out)
    assert out.shape == (N, c2, H // 2, W // 2), out.shape

    ref = ref_forward(x, params)
    # bf16 activations/weights/output (f32 accumulation) vs f32 reference
    max_err = float(jnp.max(jnp.abs(out.astype(jnp.float32) - ref)))
    assert max_err < 3e-2, max_err

    print("KERNEL_OK")
</pallas_src>

<mosaic_0001>
module attributes {stable_mosaic.version = 11 : i64} {
  func.func @_adown_kernel(%arg0: i32, %arg1: i32, %arg2: memref<1x96x2xbf16, #tpu.memory_space<vmem>>, %arg3: memref<1x96x2xbf16, #tpu.memory_space<vmem>>, %arg4: memref<1x96x2xbf16, #tpu.memory_space<vmem>>, %arg5: memref<1x96x2xbf16, #tpu.memory_space<vmem>>, %arg6: memref<1x80x2xbf16, #tpu.memory_space<vmem>>, %arg7: memref<1x80x2xbf16, #tpu.memory_space<vmem>>, %arg8: memref<1x80x2xbf16, #tpu.memory_space<vmem>>, %arg9: memref<1x80x2xbf16, #tpu.memory_space<vmem>>, %arg10: memref<9x2x4xbf16, #tpu.memory_space<vmem>>, %arg11: memref<1x4xf32, #tpu.memory_space<vmem>>, %arg12: memref<2x4xbf16, #tpu.memory_space<vmem>>, %arg13: memref<1x4xf32, #tpu.memory_space<vmem>>, %arg14: memref<1x80x8xbf16, #tpu.memory_space<vmem>>, %arg15: memref<80x4xf32, #tpu.memory_space<vmem>>) attributes {dimension_semantics = [#tpu.dimension_semantics<parallel>, #tpu.dimension_semantics<parallel>], iteration_bounds = array<i64: 2, 1>, scalar_prefetch = 0 : i64, scratch_operands = 1 : i64, tpu.core_type = #tpu.core_type<tc>, window_params = [{transform_indices = @transform_0, window_bounds = array<i64: 1, 96, 2>}, {transform_indices = @transform_1, window_bounds = array<i64: 1, 96, 2>}, {transform_indices = @transform_2, window_bounds = array<i64: 1, 96, 2>}, {transform_indices = @transform_3, window_bounds = array<i64: 1, 96, 2>}, {transform_indices = @transform_4, window_bounds = array<i64: 1, 80, 2>}, {transform_indices = @transform_5, window_bounds = array<i64: 1, 80, 2>}, {transform_indices = @transform_6, window_bounds = array<i64: 1, 80, 2>}, {transform_indices = @transform_7, window_bounds = array<i64: 1, 80, 2>}, {pipeline_mode = #tpu.pipeline_mode<synchronous>, transform_indices = @transform_8, window_bounds = array<i64: 9, 2, 4>}, {pipeline_mode = #tpu.pipeline_mode<synchronous>, transform_indices = @transform_9, window_bounds = array<i64: 1, 4>}, {pipeline_mode = #tpu.pipeline_mode<synchronous>, transform_indices = @transform_10, window_bounds = array<i64: 2, 4>}, {pipeline_mode = #tpu.pipeline_mode<synchronous>, transform_indices = @transform_11, window_bounds = array<i64: 1, 4>}, {transform_indices = @transform_12, window_bounds = array<i64: 1, 80, 8>}]} {
    %c80_i32 = arith.constant 80 : i32
    %0 = arith.muli %arg1, %c80_i32 : i32
    %1 = tpu.assume_multiple %0, 16 : i32
    %c0 = arith.constant 0 : index
    %2 = arith.index_cast %1 : i32 to index
    %c0_0 = arith.constant 0 : index
    %3 = vector.load %arg2[%c0, %2, %c0_0] : memref<1x96x2xbf16, #tpu.memory_space<vmem>>, vector<1x96x2xbf16>
    %4 = vector.shape_cast %3 : vector<1x96x2xbf16> to vector<96x2xbf16>
    %c0_1 = arith.constant 0 : index
    %5 = arith.index_cast %1 : i32 to index
    %c0_2 = arith.constant 0 : index
    %6 = vector.load %arg3[%c0_1, %5, %c0_2] : memref<1x96x2xbf16, #tpu.memory_space<vmem>>, vector<1x96x2xbf16>
    %7 = vector.shape_cast %6 : vector<1x96x2xbf16> to vector<96x2xbf16>
    %c0_3 = arith.constant 0 : index
    %8 = arith.index_cast %1 : i32 to index
    %c0_4 = arith.constant 0 : index
    %9 = vector.load %arg4[%c0_3, %8, %c0_4] : memref<1x96x2xbf16, #tpu.memory_space<vmem>>, vector<1x96x2xbf16>
    %10 = vector.shape_cast %9 : vector<1x96x2xbf16> to vector<96x2xbf16>
    %c0_5 = arith.constant 0 : index
    %11 = arith.index_cast %1 : i32 to index
    %c0_6 = arith.constant 0 : index
    %12 = vector.load %arg5[%c0_5, %11, %c0_6] : memref<1x96x2xbf16, #tpu.memory_space<vmem>>, vector<1x80x2xbf16>
    %13 = vector.shape_cast %12 : vector<1x80x2xbf16> to vector<80x2xbf16>
    %14 = vector.extract_strided_slice %4 {offsets = [0, 0], sizes = [80, 2], strides = [1, 1]} : vector<96x2xbf16> to vector<80x2xbf16>
    %15 = vector.extract_strided_slice %7 {offsets = [0, 0], sizes = [80, 2], strides = [1, 1]} : vector<96x2xbf16> to vector<80x2xbf16>
    %16 = vector.extract_strided_slice %4 {offsets = [1, 0], sizes = [80, 2], strides = [1, 1]} : vector<96x2xbf16> to vector<80x2xbf16>
    %17 = vector.extract_strided_slice %10 {offsets = [0, 0], sizes = [80, 2], strides = [1, 1]} : vector<96x2xbf16> to vector<80x2xbf16>
    %18 = vector.extract_strided_slice %10 {offsets = [1, 0], sizes = [80, 2], strides = [1, 1]} : vector<96x2xbf16> to vector<80x2xbf16>
    %19 = vector.extract_strided_slice %4 {offsets = [9, 0], sizes = [80, 2], strides = [1, 1]} : vector<96x2xbf16> to vector<80x2xbf16>
    %20 = vector.extract_strided_slice %7 {offsets = [9, 0], sizes = [80, 2], strides = [1, 1]} : vector<96x2xbf16> to vector<80x2xbf16>
    %21 = vector.extract_strided_slice %4 {offsets = [10, 0], sizes = [80, 2], strides = [1, 1]} : vector<96x2xbf16> to vector<80x2xbf16>
    %c0_7 = arith.constant 0 : index
    %c0_8 = arith.constant 0 : index
    %c0_9 = arith.constant 0 : index
    %22 = vector.load %arg10[%c0_7, %c0_8, %c0_9] : memref<9x2x4xbf16, #tpu.memory_space<vmem>>, vector<1x2x4xbf16>
    %23 = vector.shape_cast %22 : vector<1x2x4xbf16> to vector<2x4xbf16>
    %cst = arith.constant dense<0.000000e+00> : vector<80x4xf32>
    %24 = tpu.matmul %14, %23, %cst {dimension_numbers = #tpu.dot_dimension_numbers<[1], [0], [0], [1], [0, 0, 1, 1], [], []>} : vector<80x2xbf16>, vector<2x4xbf16>, vector<80x4xf32> -> vector<80x4xf32>
    %c0_10 = arith.constant 0 : index
    %c0_11 = arith.constant 0 : index
    %25 = vector.load %arg15[%c0_10, %c0_11] : memref<80x4xf32, #tpu.memory_space<vmem>>, vector<80x4xf32>
    tpu.vector_store %arg15[%c0_10, %c0_11], %24 {strides = array<i32>} : memref<80x4xf32, #tpu.memory_space<vmem>>, vector<80x4xf32>,
    %c0_12 = arith.constant 0 : index
    %c0_13 = arith.constant 0 : index
    %26 = vector.load %arg15[%c0_12, %c0_13] : memref<80x4xf32, #tpu.memory_space<vmem>>, vector<80x4xf32>
    %c1 = arith.constant 1 : index
    %c0_14 = arith.constant 0 : index
    %c0_15 = arith.constant 0 : index
    %27 = vector.load %arg10[%c1, %c0_14, %c0_15] : memref<9x2x4xbf16, #tpu.memory_space<vmem>>, vector<1x2x4xbf16>
    %28 = vector.shape_cast %27 : vector<1x2x4xbf16> to vector<2x4xbf16>
    %cst_16 = arith.constant dense<0.000000e+00> : vector<80x4xf32>
    %29 = tpu.matmul %15, %28, %cst_16 {dimension_numbers = #tpu.dot_dimension_numbers<[1], [0], [0], [1], [0, 0, 1, 1], [], []>} : vector<80x2xbf16>, vector<2x4xbf16>, vector<80x4xf32> -> vector<80x4xf32>
    %30 = arith.addf %26, %29 : vector<80x4xf32>
    %c0_17 = arith.constant 0 : index
    %c0_18 = arith.constant 0 : index
    %31 = vector.load %arg15[%c0_17, %c0_18] : memref<80x4xf32, #tpu.memory_space<vmem>>, vector<80x4xf32>
    tpu.vector_store %arg15[%c0_17, %c0_18], %30 {strides = array<i32>} : memref<80x4xf32, #tpu.memory_space<vmem>>, vector<80x4xf32>,
    %c0_19 = arith.constant 0 : index
    %c0_20 = arith.constant 0 : index
    %32 = vector.load %arg15[%c0_19, %c0_20] : memref<80x4xf32, #tpu.memory_space<vmem>>, vector<80x4xf32>
    %c2 = arith.constant 2 : index
    %c0_21 = arith.constant 0 : index
    %c0_22 = arith.constant 0 : index
    %33 = vector.load %arg10[%c2, %c0_21, %c0_22] : memref<9x2x4xbf16, #tpu.memory_space<vmem>>, vector<1x2x4xbf16>
    %34 = vector.shape_cast %33 : vector<1x2x4xbf16> to vector<2x4xbf16>
    %cst_23 = arith.constant dense<0.000000e+00> : vector<80x4xf32>
    %35 = tpu.matmul %16, %34, %cst_23 {dimension_numbers = #tpu.dot_dimension_numbers<[1], [0], [0], [1], [0, 0, 1, 1], [], []>} : vector<80x2xbf16>, vector<2x4xbf16>, vector<80x4xf32> -> vector<80x4xf32>
    %36 = arith.addf %32, %35 : vector<80x4xf32>
    %c0_24 = arith.constant 0 : index
    %c0_25 = arith.constant 0 : index
    %37 = vector.load %arg15[%c0_24, %c0_25] : memref<80x4xf32, #tpu.memory_space<vmem>>, vector<80x4xf32>
    tpu.vector_store %arg15[%c0_24, %c0_25], %36 {strides = array<i32>} : memref<80x4xf32, #tpu.memory_space<vmem>>, vector<80x4xf32>,
    %c0_26 = arith.constant 0 : index
    %c0_27 = arith.constant 0 : index
    %38 = vector.load %arg15[%c0_26, %c0_27] : memref<80x4xf32, #tpu.memory_space<vmem>>, vector<80x4xf32>
    %c3 = arith.constant 3 : index
    %c0_28 = arith.constant 0 : index
    %c0_29 = arith.constant 0 : index
    %39 = vector.load %arg10[%c3, %c0_28, %c0_29] : memref<9x2x4xbf16, #tpu.memory_space<vmem>>, vector<1x2x4xbf16>
    %40 = vector.shape_cast %39 : vector<1x2x4xbf16> to vector<2x4xbf16>
    %cst_30 = arith.constant dense<0.000000e+00> : vector<80x4xf32>
    %41 = tpu.matmul %17, %40, %cst_30 {dimension_numbers = #tpu.dot_dimension_numbers<[1], [0], [0], [1], [0, 0, 1, 1], [], []>} : vector<80x2xbf16>, vector<2x4xbf16>, vector<80x4xf32> -> vector<80x4xf32>
    %42 = arith.addf %38, %41 : vector<80x4xf32>
    %c0_31 = arith.constant 0 : index
    %c0_32 = arith.constant 0 : index
    %43 = vector.load %arg15[%c0_31, %c0_32] : memref<80x4xf32, #tpu.memory_space<vmem>>, vector<80x4xf32>
    tpu.vector_store %arg15[%c0_31, %c0_32], %42 {strides = array<i32>} : memref<80x4xf32, #tpu.memory_space<vmem>>, vector<80x4xf32>,
    %c0_33 = arith.constant 0 : index
    %c0_34 = arith.constant 0 : index
    %44 = vector.load %arg15[%c0_33, %c0_34] : memref<80x4xf32, #tpu.memory_space<vmem>>, vector<80x4xf32>
    %c4 = arith.constant 4 : index
    %c0_35 = arith.constant 0 : index
    %c0_36 = arith.constant 0 : index
    %45 = vector.load %arg10[%c4, %c0_35, %c0_36] : memref<9x2x4xbf16, #tpu.memory_space<vmem>>, vector<1x2x4xbf16>
    %46 = vector.shape_cast %45 : vector<1x2x4xbf16> to vector<2x4xbf16>
    %cst_37 = arith.constant dense<0.000000e+00> : vector<80x4xf32>
    %47 = tpu.matmul %13, %46, %cst_37 {dimension_numbers = #tpu.dot_dimension_numbers<[1], [0], [0], [1], [0, 0, 1, 1], [], []>} : vector<80x2xbf16>, vector<2x4xbf16>, vector<80x4xf32> -> vector<80x4xf32>
    %48 = arith.addf %44, %47 : vector<80x4xf32>
    %c0_38 = arith.constant 0 : index
    %c0_39 = arith.constant 0 : index
    %49 = vector.load %arg15[%c0_38, %c0_39] : memref<80x4xf32, #tpu.memory_space<vmem>>, vector<80x4xf32>
    tpu.vector_store %arg15[%c0_38, %c0_39], %48 {strides = array<i32>} : memref<80x4xf32, #tpu.memory_space<vmem>>, vector<80x4xf32>,
    %c0_40 = arith.constant 0 : index
    %c0_41 = arith.constant 0 : index
    %50 = vector.load %arg15[%c0_40, %c0_41] : memref<80x4xf32, #tpu.memory_space<vmem>>, vector<80x4xf32>
    %c5 = arith.constant 5 : index
    %c0_42 = arith.constant 0 : index
    %c0_43 = arith.constant 0 : index
    %51 = vector.load %arg10[%c5, %c0_42, %c0_43] : memref<9x2x4xbf16, #tpu.memory_space<vmem>>, vector<1x2x4xbf16>
    %52 = vector.shape_cast %51 : vector<1x2x4xbf16> to vector<2x4xbf16>
    %cst_44 = arith.constant dense<0.000000e+00> : vector<80x4xf32>
    %53 = tpu.matmul %18, %52, %cst_44 {dimension_numbers = #tpu.dot_dimension_numbers<[1], [0], [0], [1], [0, 0, 1, 1], [], []>} : vector<80x2xbf16>, vector<2x4xbf16>, vector<80x4xf32> -> vector<80x4xf32>
    %54 = arith.addf %50, %53 : vector<80x4xf32>
    %c0_45 = arith.constant 0 : index
    %c0_46 = arith.constant 0 : index
    %55 = vector.load %arg15[%c0_45, %c0_46] : memref<80x4xf32, #tpu.memory_space<vmem>>, vector<80x4xf32>
    tpu.vector_store %arg15[%c0_45, %c0_46], %54 {strides = array<i32>} : memref<80x4xf32, #tpu.memory_space<vmem>>, vector<80x4xf32>,
    %c0_47 = arith.constant 0 : index
    %c0_48 = arith.constant 0 : index
    %56 = vector.load %arg15[%c0_47, %c0_48] : memref<80x4xf32, #tpu.memory_space<vmem>>, vector<80x4xf32>
    %c6 = arith.constant 6 : index
    %c0_49 = arith.constant 0 : index
    %c0_50 = arith.constant 0 : index
    %57 = vector.load %arg10[%c6, %c0_49, %c0_50] : memref<9x2x4xbf16, #tpu.memory_space<vmem>>, vector<1x2x4xbf16>
    %58 = vector.shape_cast %57 : vector<1x2x4xbf16> to vector<2x4xbf16>
    %cst_51 = arith.constant dense<0.000000e+00> : vector<80x4xf32>
    %59 = tpu.matmul %19, %58, %cst_51 {dimension_numbers = #tpu.dot_dimension_numbers<[1], [0], [0], [1], [0, 0, 1, 1], [], []>} : vector<80x2xbf16>, vector<2x4xbf16>, vector<80x4xf32> -> vector<80x4xf32>
    %60 = arith.addf %56, %59 : vector<80x4xf32>
    %c0_52 = arith.constant 0 : index
    %c0_53 = arith.constant 0 : index
    %61 = vector.load %arg15[%c0_52, %c0_53] : memref<80x4xf32, #tpu.memory_space<vmem>>, vector<80x4xf32>
    tpu.vector_store %arg15[%c0_52, %c0_53], %60 {strides = array<i32>} : memref<80x4xf32, #tpu.memory_space<vmem>>, vector<80x4xf32>,
    %c0_54 = arith.constant 0 : index
    %c0_55 = arith.constant 0 : index
    %62 = vector.load %arg15[%c0_54, %c0_55] : memref<80x4xf32, #tpu.memory_space<vmem>>, vector<80x4xf32>
    %c7 = arith.constant 7 : index
    %c0_56 = arith.constant 0 : index
    %c0_57 = arith.constant 0 : index
    %63 = vector.load %arg10[%c7, %c0_56, %c0_57] : memref<9x2x4xbf16, #tpu.memory_space<vmem>>, vector<1x2x4xbf16>
    %64 = vector.shape_cast %63 : vector<1x2x4xbf16> to vector<2x4xbf16>
    %cst_58 = arith.constant dense<0.000000e+00> : vector<80x4xf32>
    %65 = tpu.matmul %20, %64, %cst_58 {dimension_numbers = #tpu.dot_dimension_numbers<[1], [0], [0], [1], [0, 0, 1, 1], [], []>} : vector<80x2xbf16>, vector<2x4xbf16>, vector<80x4xf32> -> vector<80x4xf32>
    %66 = arith.addf %62, %65 : vector<80x4xf32>
    %c0_59 = arith.constant 0 : index
    %c0_60 = arith.constant 0 : index
    %67 = vector.load %arg15[%c0_59, %c0_60] : memref<80x4xf32, #tpu.memory_space<vmem>>, vector<80x4xf32>
    tpu.vector_store %arg15[%c0_59, %c0_60], %66 {strides = array<i32>} : memref<80x4xf32, #tpu.memory_space<vmem>>, vector<80x4xf32>,
    %c0_61 = arith.constant 0 : index
    %c0_62 = arith.constant 0 : index
    %68 = vector.load %arg15[%c0_61, %c0_62] : memref<80x4xf32, #tpu.memory_space<vmem>>, vector<80x4xf32>
    %c8 = arith.constant 8 : index
    %c0_63 = arith.constant 0 : index
    %c0_64 = arith.constant 0 : index
    %69 = vector.load %arg10[%c8, %c0_63, %c0_64] : memref<9x2x4xbf16, #tpu.memory_space<vmem>>, vector<1x2x4xbf16>
    %70 = vector.shape_cast %69 : vector<1x2x4xbf16> to vector<2x4xbf16>
    %cst_65 = arith.constant dense<0.000000e+00> : vector<80x4xf32>
    %71 = tpu.matmul %21, %70, %cst_65 {dimension_numbers = #tpu.dot_dimension_numbers<[1], [0], [0], [1], [0, 0, 1, 1], [], []>} : vector<80x2xbf16>, vector<2x4xbf16>, vector<80x4xf32> -> vector<80x4xf32>
    %72 = arith.addf %68, %71 : vector<80x4xf32>
    %c0_66 = arith.constant 0 : index
    %c0_67 = arith.constant 0 : index
    %73 = vector.load %arg15[%c0_66, %c0_67] : memref<80x4xf32, #tpu.memory_space<vmem>>, vector<80x4xf32>
    tpu.vector_store %arg15[%c0_66, %c0_67], %72 {strides = array<i32>} : memref<80x4xf32, #tpu.memory_space<vmem>>, vector<80x4xf32>,
    %c0_68 = arith.constant 0 : index
    %c0_69 = arith.constant 0 : index
    %74 = vector.load %arg15[%c0_68, %c0_69] : memref<80x4xf32, #tpu.memory_space<vmem>>, vector<80x4xf32>
    %c0_70 = arith.constant 0 : index
    %c0_71 = arith.constant 0 : index
    %75 = vector.load %arg11[%c0_70, %c0_71] : memref<1x4xf32, #tpu.memory_space<vmem>>, vector<1x4xf32>
    %76 = vector.broadcast %75 : vector<1x4xf32> to vector<80x4xf32>
    %77 = arith.addf %74, %76 : vector<80x4xf32>
    %78 = arith.negf %77 : vector<80x4xf32>
    %79 = math.exp %78 : vector<80x4xf32>
    %cst_72 = arith.constant 1.000000e+00 : f32
    %80 = vector.broadcast %cst_72 : f32 to vector<80x4xf32>
    %81 = arith.addf %80, %79 : vector<80x4xf32>
    %82 = arith.divf %80, %81 : vector<80x4xf32>
    %83 = arith.mulf %77, %82 : vector<80x4xf32>
    %c0_73 = arith.constant 0 : index
    %c0_74 = arith.constant 0 : index
    %c0_75 = arith.constant 0 : index
    %84 = vector.load %arg6[%c0_73, %c0_74, %c0_75] : memref<1x80x2xbf16, #tpu.memory_space<vmem>>, vector<1x80x2xbf16>
    %85 = vector.shape_cast %84 : vector<1x80x2xbf16> to vector<80x2xbf16>
    %c0_76 = arith.constant 0 : index
    %c0_77 = arith.constant 0 : index
    %c0_78 = arith.constant 0 : index
    %86 = vector.load %arg7[%c0_76, %c0_77, %c0_78] : memref<1x80x2xbf16, #tpu.memory_space<vmem>>, vector<1x80x2xbf16>
    %87 = vector.shape_cast %86 : vector<1x80x2xbf16> to vector<80x2xbf16>
    %88 = arith.maximumf %85, %87 : vector<80x2xbf16>
    %c0_79 = arith.constant 0 : index
    %c0_80 = arith.constant 0 : index
    %c0_81 = arith.constant 0 : index
    %89 = vector.load %arg8[%c0_79, %c0_80, %c0_81] : memref<1x80x2xbf16, #tpu.memory_space<vmem>>, vector<1x80x2xbf16>
    %90 = vector.shape_cast %89 : vector<1x80x2xbf16> to vector<80x2xbf16>
    %c0_82 = arith.constant 0 : index
    %c0_83 = arith.constant 0 : index
    %c0_84 = arith.constant 0 : index
    %91 = vector.load %arg9[%c0_82, %c0_83, %c0_84] : memref<1x80x2xbf16, #tpu.memory_space<vmem>>, vector<1x80x2xbf16>
    %92 = vector.shape_cast %91 : vector<1x80x2xbf16> to vector<80x2xbf16>
    %93 = arith.maximumf %90, %92 : vector<80x2xbf16>
    %94 = arith.maximumf %88, %93 : vector<80x2xbf16>
    %c0_85 = arith.constant 0 : index
    %c0_86 = arith.constant 0 : index
    %95 = vector.load %arg12[%c0_85, %c0_86] : memref<2x4xbf16, #tpu.memory_space<vmem>>, vector<2x4xbf16>
    %cst_87 = arith.constant dense<0.000000e+00> : vector<80x4xf32>
    %96 = tpu.matmul %94, %95, %cst_87 {dimension_numbers = #tpu.dot_dimension_numbers<[1], [0], [0], [1], [0, 0, 1, 1], [], []>} : vector<80x2xbf16>, vector<2x4xbf16>, vector<80x4xf32> -> vector<80x4xf32>
    %c0_88 = arith.constant 0 : index
    %c0_89 = arith.constant 0 : index
    %97 = vector.load %arg13[%c0_88, %c0_89] : memref<1x4xf32, #tpu.memory_space<vmem>>, vector<1x4xf32>
    %98 = vector.broadcast %97 : vector<1x4xf32> to vector<80x4xf32>
    %99 = arith.addf %96, %98 : vector<80x4xf32>
    %100 = arith.negf %99 : vector<80x4xf32>
    %101 = math.exp %100 : vector<80x4xf32>
    %cst_90 = arith.constant 1.000000e+00 : f32
    %102 = vector.broadcast %cst_90 : f32 to vector<80x4xf32>
    %103 = arith.addf %102, %101 : vector<80x4xf32>
    %104 = arith.divf %102, %103 : vector<80x4xf32>
    %105 = arith.mulf %99, %104 : vector<80x4xf32>
    %106 = tpu.concatenate %83, %105 in 1 : vector<80x4xf32>, vector<80x4xf32> -> vector<80x8xf32>
    %107 = arith.truncf %106 : vector<80x8xf32> to vector<80x8xbf16>
    %c0_91 = arith.constant 0 : index
    %c0_92 = arith.constant 0 : index
    %c0_93 = arith.constant 0 : index
    %108 = vector.load %arg14[%c0_91, %c0_92, %c0_93] : memref<1x80x8xbf16, #tpu.memory_space<vmem>>, vector<1x80x8xbf16>
    %109 = vector.shape_cast %108 : vector<1x80x8xbf16> to vector<80x8xbf16>
    %110 = vector.shape_cast %107 : vector<80x8xbf16> to vector<1x80x8xbf16>
    tpu.vector_store %arg14[%c0_91, %c0_92, %c0_93], %110 {strides = array<i32>} : memref<1x80x8xbf16, #tpu.memory_space<vmem>>, vector<1x80x8xbf16>,
    return
  }
  func.func @transform_0(%arg0: i32, %arg1: i32) -> (i32, i32, i32) {
    %c0_i32 = arith.constant 0 : i32
    %c0_i32_0 = arith.constant 0 : i32
    %c0_i32_1 = arith.constant 0 : i32
    return %arg0, %c0_i32, %c0_i32_0 : i32, i32, i32
  }
  func.func @transform_1(%arg0: i32, %arg1: i32) -> (i32, i32, i32) {
    %c0_i32 = arith.constant 0 : i32
    %c0_i32_0 = arith.constant 0 : i32
    %c0_i32_1 = arith.constant 0 : i32
    return %arg0, %c0_i32, %c0_i32_0 : i32, i32, i32
  }
  func.func @transform_2(%arg0: i32, %arg1: i32) -> (i32, i32, i32) {
    %c0_i32 = arith.constant 0 : i32
    %c0_i32_0 = arith.constant 0 : i32
    %c0_i32_1 = arith.constant 0 : i32
    return %arg0, %c0_i32, %c0_i32_0 : i32, i32, i32
  }
  func.func @transform_3(%arg0: i32, %arg1: i32) -> (i32, i32, i32) {
    %c0_i32 = arith.constant 0 : i32
    %c0_i32_0 = arith.constant 0 : i32
    %c0_i32_1 = arith.constant 0 : i32
    return %arg0, %c0_i32, %c0_i32_0 : i32, i32, i32
  }
  func.func @transform_4(%arg0: i32, %arg1: i32) -> (i32, i32, i32) {
    %c0_i32 = arith.constant 0 : i32
    %c0_i32_0 = arith.constant 0 : i32
    return %arg0, %arg1, %c0_i32 : i32, i32, i32
  }
  func.func @transform_5(%arg0: i32, %arg1: i32) -> (i32, i32, i32) {
    %c0_i32 = arith.constant 0 : i32
    %c0_i32_0 = arith.constant 0 : i32
    return %arg0, %arg1, %c0_i32 : i32, i32, i32
  }
  func.func @transform_6(%arg0: i32, %arg1: i32) -> (i32, i32, i32) {
    %c0_i32 = arith.constant 0 : i32
    %c0_i32_0 = arith.constant 0 : i32
    return %arg0, %arg1, %c0_i32 : i32, i32, i32
  }
  func.func @transform_7(%arg0: i32, %arg1: i32) -> (i32, i32, i32) {
    %c0_i32 = arith.constant 0 : i32
    %c0_i32_0 = arith.constant 0 : i32
    return %arg0, %arg1, %c0_i32 : i32, i32, i32
  }
  func.func @transform_8(%arg0: i32, %arg1: i32) -> (i32, i32, i32) {
    %c0_i32 = arith.constant 0 : i32
    %c0_i32_0 = arith.constant 0 : i32
    %c0_i32_1 = arith.constant 0 : i32
    %c0_i32_2 = arith.constant 0 : i32
    return %c0_i32, %c0_i32_0, %c0_i32_1 : i32, i32, i32
  }
  func.func @transform_9(%arg0: i32, %arg1: i32) -> (i32, i32) {
    %c0_i32 = arith.constant 0 : i32
    %c0_i32_0 = arith.constant 0 : i32
    %c0_i32_1 = arith.constant 0 : i32
    return %c0_i32, %c0_i32_0 : i32, i32
  }
  func.func @transform_10(%arg0: i32, %arg1: i32) -> (i32, i32) {
    %c0_i32 = arith.constant 0 : i32
    %c0_i32_0 = arith.constant 0 : i32
    %c0_i32_1 = arith.constant 0 : i32
    return %c0_i32, %c0_i32_0 : i32, i32
  }
  func.func @transform_11(%arg0: i32, %arg1: i32) -> (i32, i32) {
    %c0_i32 = arith.constant 0 : i32
    %c0_i32_0 = arith.constant 0 : i32
    %c0_i32_1 = arith.constant 0 : i32
    return %c0_i32, %c0_i32_0 : i32, i32
  }
  func.func @transform_12(%arg0: i32, %arg1: i32) -> (i32, i32, i32) {
    %c0_i32 = arith.constant 0 : i32
    %c0_i32_0 = arith.constant 0 : i32
    return %arg0, %arg1, %c0_i32 : i32, i32, i32
  }
}

</mosaic_0001>

<bundles_post_ra>
// kernel: adown_forward.1
= control target key start
LH: loop header
LB: loop body
LE: loop exit
PB: predicated region body
PF: predicated region fallthrough
CT: control target
= control target key end

     0   :  { %s3444_s21 = smov 0   ;;  %s3446_s22 = smov 0   ;;  %s4208_s0 = inlined_call_operand.vmem [shape: bf16[2,96,2], index: 0, kind: input, shape index: {}]   ;;  %s4209_s1 = inlined_call_operand.vmem [shape: bf16[2,96,2], index: 1, kind: input, shape index: {}]   ;;  %s4210_s2 = inlined_call_operand.vmem [shape: bf16[2,96,2], index: 2, kind: input, shape index: {}]   ;;  %s4211_s3 = inlined_call_operand.vmem [shape: bf16[2,96,2], index: 3, kind: input, shape index: {}]   ;;  %s4212_s4 = inlined_call_operand.vmem [shape: bf16[2,80,2], index: 4, kind: input, shape index: {}]   ;;  %s4213_s5 = inlined_call_operand.vmem [shape: bf16[2,80,2], index: 5, kind: input, shape index: {}]   ;;  %s4214_s6 = inlined_call_operand.vmem [shape: bf16[2,80,2], index: 6, kind: input, shape index: {}]   ;;  %s4215_s7 = inlined_call_operand.vmem [shape: bf16[2,80,2], index: 7, kind: input, shape index: {}]   ;;  %s4216_s8 = inlined_call_operand.vmem [shape: bf16[9,2,4], index: 8, kind: input, shape index: {}]   ;;  %s4217_s9 = inlined_call_operand.vmem [shape: f32[1,4], index: 9, kind: input, shape index: {}]   ;;  %s4218_s10 = inlined_call_operand.vmem [shape: bf16[2,4], index: 10, kind: input, shape index: {}]   ;;  %s4219_s11 = inlined_call_operand.vmem [shape: f32[1,4], index: 11, kind: input, shape index: {}]   ;;  %s4220_s12 = inlined_call_operand.vmem [shape: bf16[2,80,8], index: 12, kind: output, shape index: {}]  }
   0x1   :  { %s3448_s23 = smov 0  }
   0x2 LB: > { %s34_s24 = sadd.s32 1, %s3370_s22  ;;  %p2753_p0 = scmp.ge.s32.totalorder %s3374_s23, 1  ;;  %s3374_s23 = sphi %s3448_s23, %s22_s23   ;;  %s3370_s22 = sphi %s3446_s22, %s4222_s22   ;;  %s3366_s21 = sphi %s3444_s21, %s4221_s21  }
   0x3   : > { %p36_p1 = scmp.ge.s32.totalorder %s34_s24, 2  ;;  %p474_p2 = scmp.lt.s32.totalorder %s3374_s23, 3 }
   0x5   : > { %s4224_s24 = smov (%p36_p1, %s34_s24), 0  ;;  %p475_p3 = pnand %p2753_p0, %p474_p2 }
   0x6   : > { %vm740_vm0 = vcmask (!%p475_p3), 1040384   ;;  %v2773_v0 = vld [vmem:[%s4216_s8 + $0x1] sm:$0x1] (!%p475_p3)  ;;  %v698_v1 = vld [vmem:[%s4216_s8] sm:$0x1] (!%p475_p3)  ;;  %v3376_v2 = vmov (!%p475_p3), 0.0  }
   0x7   : > { %478 = sbr.rel (%p475_p3) target bundleno = 581 (0x245), region = 68  ;;  %2986 = vmatprep.subr.bf16.mxu1 (!%p475_p3), %v3376_v2  ;;  %2964 = vmatprep.subr.bf16.mxu0 (!%p475_p3), %v3376_v2  ;;  %v881_v3 = vsel (!%p475_p3), %vm740_vm0, %v2773_v0, 0  ;;  %v742_v4 = vsel (!%p475_p3), %vm740_vm0, %v698_v1, 0  ;;  %p571_p4 = scmp.lt.s32.totalorder (!%p475_p3), %s3366_s21, 1  ;;  %vm3377_vm1 = vmmov (!%p475_p3), 0   ;;  %vm724_vm2 = vcmask (!%p475_p3), 15360  }
   0x8   : > { %2987 = vmatpush3.bf16.msra.mxu1 (!%p475_p3), %v881_v3  ;;  %2965 = vmatpush3.bf16.msra.mxu0 (!%p475_p3), %v742_v4  ;;  %v2791_v5 = vld [vmem:[%s4216_s8 + $0x3] sm:$0x1] (!%p475_p3)  ;;  %v2784_v6 = vld [vmem:[%s4216_s8 + $0x2] sm:$0x1] (!%p475_p3)  ;;  %vm991_vm3 = vsmask.f32 (!%p475_p3), 7424 }
   0x9   : > { %2966 = vmatprep.mubr.msk.bf16.mxu0 (!%p475_p3), %vm3377_vm1, %v3376_v2  ;;  %2988 = vmatprep.mubr.msk.bf16.mxu1 (!%p475_p3), %vm3377_vm1, %v3376_v2  ;;  %v1195_v14 = vsel (!%p475_p3), %vm740_vm0, %v2791_v5, 0  ;;  %v1047_v19 = vsel (!%p475_p3), %vm740_vm0, %v2784_v6, 0  ;;  %vm1967_vm4 = vcmask (!%p475_p3), 1046528   ;;  %vm817_vm5 = vcmask (!%p475_p3), 31744  }
   0xa   : > { %3030 = vmatprep.subr.bf16.mxu1 (!%p475_p3), %v3376_v2  ;;  %3008 = vmatprep.subr.bf16.mxu0 (!%p475_p3), %v3376_v2  ;;  %vm2541_vm6 = vcmask (!%p475_p3), 60416  }
   0xe   : > { %s4226_s21 = smov (!%p571_p4, %s3366_s21), 1 }
   0xf   : > { %s3481_s29 = smul.u32 48, %s4226_s21 }
  0x10   : > { %s3867_s13 = smul.u32 40, %s4226_s21 }
  0x11   : > { %s3487_s14 = scalar_lea.vmem %s4208_s0, %s3481_s29  ;;  %s3493_s17 = scalar_lea.vmem %s4209_s1, %s3481_s29 }
  0x12   : > { %v647_v7 = vld [vmem:[%s3487_s14] sm:$0xf]  ;;  %v648_v8 = vld [vmem:[%s3487_s14 + $0x4] sm:$0xf]  ;;  %v649_v12 = vld [vmem:[%s3487_s14 + $0x8] sm:$0xf]  ;;  %s3569_s28 = scalar_lea.vmem %s4210_s2, %s3481_s29  ;;  %s3595_s15 = scalar_lea.vmem %s4211_s3, %s3481_s29 }
  0x13   : > { %v661_v9 = vld [vmem:[%s3493_s17] sm:$0xf]  ;;  %v3504_v10 = vcombine.low %v647_v7, %v648_v8  ;;  %v662_v11 = vld [vmem:[%s3493_s17 + $0x4] sm:$0xf]  ;;  %v3509_v15 = vcombine.low %v648_v8, %v649_v12  ;;  %v663_v16 = vld [vmem:[%s3493_s17 + $0x8] sm:$0xf]  ;;  %s3891_s20 = scalar_lea.vmem %s4214_s6, %s3867_s13  ;;  %s3897_s27 = scalar_lea.vmem %s4215_s7, %s3867_s13 }
  0x14   : > { %v2774_v13 = vcombine.low %v661_v9, %v662_v11  ;;  %v650_v17 = vld [vmem:[%s3487_s14 + $0xc] sm:$0xf]  ;;  %v2833_v18 = vcombine.low %v662_v11, %v663_v16  ;;  %v651_v21 = vld [vmem:[%s3487_s14 + $0x10] sm:$0xf]  ;;  %v652_v22 = vld [vmem:[%s3487_s14 + $0x14] sm:$0xf] }
  0x15   : > { %2967 = vmatmul.mubr.msk.bf16.vlgmr.msra.gmra.mrb[0].mxu0 %vm724_vm2, %v3504_v10  ;;  %v664_v20 = vld [vmem:[%s3493_s17 + $0xc] sm:$0xf]  ;;  %v3524_v24 = vcombine.low %v650_v17, %v651_v21  ;;  %v665_v25 = vld [vmem:[%s3493_s17 + $0x10] sm:$0xf]  ;;  %v666_v26 = vld [vmem:[%s3493_s17 + $0x14] sm:$0xf]  ;;  %v3528_v27 = vcombine.low %v649_v12, %v650_v17  ;;  %v3589_v53 = vcombine.low %v651_v21, %v652_v22 }
  0x16   : > { %2989 = vmatmul.mubr.msk.bf16.vlgmr.msra.gmra.mrb[0].mxu1 %vm724_vm2, %v2774_v13  ;;  %2970 = vmatprep.mubr.msk.bf16.mxu0 %vm3377_vm1, %v3376_v2  ;;  %v1803_v23 = vshll.u32 %v2833_v18, 16  ;;  %v3530_v28 = vcombine.low %v664_v20, %v665_v25  ;;  %v653_v29 = vld [vmem:[%s3487_s14 + $0x18] sm:$0xf]  ;;  %v654_v30 = vld [vmem:[%s3487_s14 + $0x1c] sm:$0xf]  ;;  %v1801_v32 = vshrl.u32 %v2833_v18, 16  ;;  %v2775_v38 = vcombine.low %v663_v16, %v664_v20 }
  0x17   : > { %3031 = vmatpush3.bf16.msra.mxu1 %v1195_v14  ;;  %2992 = vmatprep.mubr.msk.bf16.mxu1 %vm3377_vm1, %v3376_v2  ;;  %v3535_v31 = vld [vmem:[%s3493_s17 + $0x18] sm:$0xf]  ;;  %v3538_v34 = vcombine.low %v652_v22, %v653_v29  ;;  %v3541_v35 = vld [vmem:[%s3493_s17 + $0x1c] sm:$0xf]  ;;  %v655_v37 = vld [vmem:[%s3487_s14 + $0x20] sm:$0xf]  ;;  %v2776_v54 = vcombine.low %v665_v25, %v666_v26  ;;  %v3619_v3 = vcombine.low %v653_v29, %v654_v30 }
  0x18   : > { %3009 = vmatpush3.bf16.msra.mxu0 %v1047_v19  ;;  %3074 = vmatprep.subr.bf16.mxu1 %v3376_v2  ;;  %v1805_v33 = vrot.slane %v1803_v23, 1  ;;  %v3544_v36 = vcombine.low %v666_v26, %v3535_v31  ;;  %v1808_v39 = vshll.u32 %v3530_v28, 16  ;;  %v656_v40 = vld [vmem:[%s3487_s14 + $0x24] sm:$0xf]  ;;  %v3551_v41 = vld [vmem:[%s3487_s14 + $0x28] sm:$0xf]  ;;  %v3553_v42 = vcombine.low %v654_v30, %v655_v37 }
  0x19   : > { %3052 = vmatprep.subr.bf16.mxu0 %v3376_v2  ;;  %v3556_v43 = vcombine.low %v656_v40, %v3551_v41  ;;  %v3559_v44 = vld [vmem:[%s3493_s17 + $0x20] sm:$0xf]  ;;  %v3562_v45 = vld [vmem:[%s3493_s17 + $0x24] sm:$0xf]  ;;  %v671_v46 = vld [vmem:[%s3493_s17 + $0x28] sm:$0xf]  ;;  %v2777_v5 = vcombine.low %v3535_v31, %v3541_v35  ;;  %v3625_v6 = vcombine.low %v655_v37, %v656_v40 }
  0x1a   : > { %v1810_v47 = vrot.slane %v1808_v39, 1  ;;  %v3573_v48 = vcombine.low %v3541_v35, %v3559_v44  ;;  %v3576_v49 = vcombine.low %v3562_v45, %v671_v46  ;;  %v1806_v50 = vor.u32 %v1805_v33, %v1801_v32  ;;  %v3599_v56 = vld [vmem:[%s3569_s28 + $0x18] sm:$0xff]   ;;  %v3602_v57 = vld [vmem:[%s3569_s28 + $0x20] sm:$0xff]   ;;  %v3269_v8 = vld [vmem:[%s3569_s28 + $0x28] ss:$0 sps:$4 sm:$0xff]  }
  0x1b   : > { %v1626_v52 = vshll.u32 %v3509_v15, 16  ;;  %v994_v55 = vshll.u32 %v3504_v10, 16  ;;  %v1624_v58 = vshrl.u32 %v3509_v15, 16  ;;  %v1473_v60 = vshll.u32 %v3599_v56, 16  ;;  %v3655_v40 = vld [vmem:[%s3487_s14 + $0x2c] ss:$0 sps:$4 sm:$0xff]   ;;  %s3879_s14 = scalar_lea.vmem %s4212_s4, %s3867_s13 }
  0x1c   : > { %v3586_v51 = vsel %vm991_vm3, %v1806_v50, %v1810_v47  ;;  %v992_v61 = vshrl.u32 %v3504_v10, 16  ;;  %v998_v62 = vshll.u32 %v3528_v27, 16  ;;  %v1477_v63 = vshrl.u32 %v3599_v56, 16  ;;  %v2813_v10 = vld [vmem:[%s4216_s8 + $0x5] sm:$0x1] }
  0x1d   : > { %2971 = vmatmul.mubr.msk.bf16.gmra.mrb[4].mxu0 %vm724_vm2, %v3528_v27  ;;  %v1628_v59 = vrot.slane %v1626_v52, 1  ;;  %v1480_v0 = vshll.u32 %v3602_v57, 16  ;;  %v3615_v1 = vrot.slane %v994_v55, 1  ;;  %v3621_v4 = vrot.slane %v1473_v60, 1 }
  0x1e   : > { %2993 = vmatmul.mubr.msk.bf16.gmra.mrb[4].mxu1 %vm724_vm2, %v2775_v38  ;;  %2974 = vmatprep.mubr.msk.bf16.mxu0 %vm3377_vm1, %v3376_v2  ;;  %v1484_v9 = vshrl.u32 %v3602_v57, 16  ;;  %v1631_v13 = vshll.u32 %v3524_v24, 16  ;;  %v1635_v14 = vshrl.u32 %v3524_v24, 16  ;;  %v2778_v16 = vcombine.low %v3559_v44, %v3562_v45  ;;  %v3271_v44 = vld [vmem:[%s3493_s17 + $0x2c] ss:$0 sps:$4 sm:$0xff]   ;;  %s3885_s17 = scalar_lea.vmem %s4213_s5, %s3867_s13 }
  0x1f   : > { %2996 = vmatprep.mubr.msk.bf16.mxu1 %vm3377_vm1, %v3376_v2  ;;  %v1482_v7 = vrot.slane %v1480_v0, 1  ;;  %v1479_v11 = vor.u32 %v1477_v63, %v3621_v4  ;;  %v1629_v12 = vor.u32 %v1628_v59, %v1624_v58  ;;  %v1488_v18 = vshll.u32 %v3269_v8, 16 }
  0x20   : > { %v1639_v19 = vshll.u32 %v3538_v34, 16  ;;  %v1633_v21 = vrot.slane %v1631_v13, 1  ;;  %v1812_v22 = vshrl.u32 %v3530_v28, 16  ;;  %v1816_v23 = vshll.u32 %v3544_v36, 16 }
  0x21   : > { %v1486_v17 = vor.u32 %v1484_v9, %v1482_v7  ;;  %v3636_v20 = vsel %vm991_vm3, %v1479_v11, %v1482_v7  ;;  %v1490_v25 = vrot.slane %v1488_v18, 1  ;;  %v1643_v29 = vshrl.u32 %v3538_v34, 16 }
  0x22   : > { %v1641_v26 = vrot.slane %v1639_v19, 1  ;;  %v1647_v30 = vshll.u32 %v3553_v42, 16  ;;  %v3645_v31 = vsel %vm991_vm3, %v1629_v12, %v1633_v21  ;;  %v1637_v32 = vor.u32 %v1635_v14, %v1633_v21 }
  0x23   : > { %v1814_v33 = vor.u32 %v1812_v22, %v1810_v47  ;;  %v1818_v35 = vrot.slane %v1816_v23, 1  ;;  %v3651_v28 = vsel %vm991_vm3, %v1486_v17, %v1490_v25  ;;  %v1820_v39 = vshrl.u32 %v3544_v36, 16 }
  0x24   : > { %v1645_v37 = vor.u32 %v1643_v29, %v1641_v26  ;;  %v1649_v38 = vrot.slane %v1647_v30, 1  ;;  %v3661_v45 = vsel %vm991_vm3, %v1637_v32, %v1641_v26  ;;  %v1824_v47 = vshll.u32 %v3573_v48, 16 }
  0x25   : > { %2975 = vmatmul.mubr.msk.bf16.gmra.mrb[8].mxu0 %vm724_vm2, %v3589_v53  ;;  %v3664_v46 = vsel %vm991_vm3, %v1814_v33, %v1818_v35  ;;  %v1651_v50 = vshrl.u32 %v3553_v42, 16  ;;  %v1822_v36 = vor.u32 %v1820_v39, %v1818_v35  ;;  %v1828_v55 = vshrl.u32 %v3573_v48, 16  ;;  %v3259_v39 = vld [vmem:[%s3569_s28 + $0x8] sm:$0xff]  }
  0x26   : > { %2997 = vmatmul.mubr.msk.bf16.gmra.mrb[8].mxu1 %vm724_vm2, %v2776_v54  ;;  %2978 = vmatprep.mubr.msk.bf16.mxu0 %vm3377_vm1, %v3376_v2  ;;  %v3669_v52 = vsel %vm991_vm3, %v1645_v37, %v1649_v38  ;;  %v1655_v54 = vshll.u32 %v3556_v43, 16  ;;  %v1826_v58 = vrot.slane %v1824_v47, 1  ;;  %v1832_v60 = vshll.u32 %v3576_v49, 16 }
  0x27   : > { %3000 = vmatprep.mubr.msk.bf16.mxu1 %vm3377_vm1, %v3376_v2  ;;  %v1653_v59 = vor.u32 %v1651_v50, %v1649_v38  ;;  %v1659_v63 = vshrl.u32 %v3556_v43, 16  ;;  %v1836_v7 = vshrl.u32 %v3576_v49, 16  ;;  %v1840_v8 = vshll.u32 %v3271_v44, 16 }
  0x28   : > { %v1657_v0 = vrot.slane %v1655_v54, 1  ;;  %v3678_v9 = vsel %vm991_vm3, %v1822_v36, %v1826_v58  ;;  %v1830_v11 = vor.u32 %v1828_v55, %v1826_v58  ;;  %v1834_v12 = vrot.slane %v1832_v60, 1  ;;  %v3260_v55 = vld [vmem:[%s3569_s28 + $0x10] sm:$0xff]  }
  0x29   : > { %v1842_v17 = vrot.slane %v1840_v8, 1  ;;  %v1968_v49 = vrot.slane %v3509_v15, 1  ;;  %v1000_v21 = vrot.slane %v998_v62, 1  ;;  %v997_v22 = vor.u32 %v3615_v1, %v992_v61  ;;  %v3718_v1 = vld [vmem:[%s3569_s28] sm:$0xff]  }
  0x2a   : > { %v3681_v13 = vsel %vm991_vm3, %v1653_v59, %v1657_v0  ;;  %v1661_v48 = vor.u32 %v1659_v63, %v1657_v0  ;;  %v3686_v18 = vsel %vm991_vm3, %v1830_v11, %v1834_v12  ;;  %v1838_v19 = vor.u32 %v1836_v7, %v1834_v12 }
  0x2b   : > { %v1969_v25 = vrot.slane %v3524_v24, 1  ;;  %v1971_v62 = vrot.slane %v3538_v34, 1  ;;  %v1001_v24 = vsel %vm991_vm3, %v997_v22, %v1000_v21  ;;  %v1002_v26 = vshrl.u32 %v3528_v27, 16  ;;  %v2802_v34 = vld [vmem:[%s4216_s8 + $0x4] sm:$0x1] }
  0x2c   : > { %v3704_v15 = vsel %vm991_vm3, %v1838_v19, %v1842_v17  ;;  %v1005_v29 = vshll.u32 %v3589_v53, 16  ;;  %v1508_v30 = vsel %vm740_vm0, %v2813_v10, 0  ;;  %v1343_v32 = vsel %vm740_vm0, %v2802_v34, 0  ;;  %v3264_v19 = vld [vmem:[%s3595_s15] sm:$0xff]  }
  0x2d   : > { %2979 = vmatmul.mubr.msk.bf16.gmra.mrb[12].mxu0 %vm724_vm2, %v3619_v3  ;;  %v3714_v61 = vsel %vm1967_vm4, %v1969_v25, %v1971_v62  ;;  %v1004_v27 = vor.u32 %v1002_v26, %v1000_v21  ;;  %v1973_v35 = vrot.slane %v3553_v42, 1  ;;  %v1009_v44 = vshrl.u32 %v3589_v53, 16  ;;  %v2820_v21 = vld [vmem:[%s4216_s8 + $0x6] sm:$0x1]  ;;  %v3265_v26 = vld [vmem:[%s3595_s15 + $0x8] sm:$0xff]  }
  0x2e   : > { %3001 = vmatmul.mubr.msk.bf16.gmra.mrb[12].mxu1 %vm724_vm2, %v2777_v5  ;;  %2982 = vmatprep.mubr.msk.bf16.mxu0 %vm3377_vm1, %v3376_v2  ;;  %v1663_v5 = vshll.u32 %v3655_v40, 16  ;;  %v1007_v33 = vrot.slane %v1005_v29, 1  ;;  %v1012_v47 = vshll.u32 %v3619_v3, 16  ;;  %v1975_v36 = vrot.slane %v3556_v43, 1 }
  0x2f   : > { %3004 = vmatprep.mubr.msk.bf16.mxu1 %vm3377_vm1, %v3376_v2  ;;  %v3738_v37 = vsel %vm1967_vm4, %v1971_v62, %v1973_v35  ;;  %v1016_v58 = vshrl.u32 %v3619_v3, 16  ;;  %v1019_v59 = vshll.u32 %v3625_v6, 16  ;;  %v2785_v43 = vcombine.low %v3551_v41, %v3551_v41 }
  0x30   : > { %v1665_v14 = vrot.slane %v1663_v5, 1  ;;  %v1008_v38 = vsel %vm991_vm3, %v1004_v27, %v1007_v33  ;;  %v1011_v42 = vor.u32 %v1009_v44, %v1007_v33  ;;  %v1014_v50 = vrot.slane %v1012_v47, 1  ;;  %v3267_v33 = vld [vmem:[%s3595_s15 + $0x18] sm:$0xff]  }
  0x31   : > { %v3752_v54 = vsel %vm1967_vm4, %v1973_v35, %v1975_v36  ;;  %v1021_v63 = vrot.slane %v1019_v59, 1  ;;  %v1977_v0 = vrot.slane %v3655_v40, 1  ;;  %v1023_v7 = vshrl.u32 %v3625_v6, 16  ;;  %v2844_v35 = vld [vmem:[%s4216_s8 + $0x8] sm:$0x1] }
  0x32   : > { %v3698_v23 = vsel %vm991_vm3, %v1661_v48, %v1665_v14  ;;  %v1015_v53 = vsel %vm991_vm3, %v1011_v42, %v1014_v50  ;;  %v1018_v60 = vor.u32 %v1016_v58, %v1014_v50  ;;  %v1027_v8 = vshll.u32 %v2785_v43, 16  ;;  %v2189_v50 = vld [vmem:[%s3879_s14 + $0x8] sm:$0xf] }
  0x33   : > { %v3768_v3 = vsel %vm1967_vm4, %v1975_v36, %v1977_v0  ;;  %v1025_v41 = vor.u32 %v1023_v7, %v1021_v63  ;;  %v1455_v40 = vshll.u32 %v3718_v1, 16  ;;  %v1453_v48 = vshrl.u32 %v3718_v1, 16  ;;  %v2190_v36 = vld [vmem:[%s3879_s14 + $0xc] sm:$0xf]  ;;  %v2219_v58 = vld [vmem:[%s3891_s20 + $0x8] sm:$0xf] }
  0x34   : > { %v1022_v5 = vsel %vm991_vm3, %v1018_v60, %v1021_v63  ;;  %v1029_v11 = vrot.slane %v1027_v8, 1  ;;  %v1463_v22 = vshrl.u32 %v3259_v39, 16  ;;  %v1683_v10 = vsel %vm740_vm0, %v2820_v21, 0  ;;  %v2220_v63 = vld [vmem:[%s3891_s20 + $0xc] sm:$0xf] }
  0x35   : > { %2983 = vmatmul.mubr.msk.bf16.gmra.mrb[16].mxu0 %vm724_vm2, %v3625_v6  ;;  %v1459_v6 = vshll.u32 %v3259_v39, 16  ;;  %v1457_v14 = vrot.slane %v1455_v40, 1  ;;  %v1470_v34 = vshrl.u32 %v3260_v55, 16  ;;  %v2229_v43 = vld [vmem:[%s3897_s27 + $0x8] sm:$0xf] }
  0x36   : > { %3005 = vmatmul.mubr.msk.bf16.gmra.mrb[16].mxu1 %vm724_vm2, %v2778_v16  ;;  %3010 = vmatprep.mubr.msk.bf16.mxu0 %vm3377_vm1, %v3376_v2  ;;  %v3708_v16 = vsel %vm1967_vm4, %v1968_v49, %v1969_v25  ;;  %v1030_v12 = vsel %vm991_vm3, %v1025_v41, %v1029_v11  ;;  %v2832_v49 = vld [vmem:[%s4216_s8 + $0x7] sm:$0x1]  ;;  %v1466_v25 = vshll.u32 %v3260_v55, 16  ;;  %v2230_v0 = vld [vmem:[%s3897_s27 + $0xc] sm:$0xf] }
  0x37   : > { %3032 = vmatprep.mubr.msk.bf16.mxu1 %vm3377_vm1, %v3376_v2  ;;  %v1458_v17 = vor.u32 %v1457_v14, %v1453_v48  ;;  %v1860_v62 = vsel %vm740_vm0, %v2832_v49, 0  ;;  %v2240_v7 = vmax.bf16 %v2230_v0, %v2220_v63  ;;  %v2191_v40 = vld [vmem:[%s3879_s14 + $0x10] sm:$0xf]  ;;  %v2202_v48 = vld [vmem:[%s3885_s17 + $0x14] sm:$0xf] }
  0x38   : > { %v2221_v14 = vld [vmem:[%s3891_s20 + $0x10] sm:$0xf] }
  0x3d   : > { %3011 = vmatmul.mubr.msk.bf16.vlgmr.msra.gmra.mrb[20].mxu0 %vm724_vm2, %v1001_v24 }
  0x3e   : > { %3033 = vmatmul.mubr.msk.bf16.vlgmr.msra.gmra.mrb[20].mxu1 %vm724_vm2, %v3718_v1  ;;  %3014 = vmatprep.mubr.msk.bf16.mxu0 %vm3377_vm1, %v3376_v2  ;;  %v1468_v1 = vrot.slane %v1466_v25, 1  ;;  %v2193_v25 = vld [vmem:[%s3879_s14 + $0x18] sm:$0xf] }
  0x3f   : > { %3075 = vmatpush3.bf16.msra.mxu1 %v1508_v30  ;;  %3036 = vmatprep.mubr.msk.bf16.mxu1 %vm3377_vm1, %v3376_v2 }
  0x40   : > { %3053 = vmatpush3.bf16.msra.mxu0 %v1343_v32  ;;  %3118 = vmatprep.subr.bf16.mxu1 %v3376_v2  ;;  %v1472_v30 = vor.u32 %v1470_v34, %v1468_v1  ;;  %v3266_v32 = vld [vmem:[%s3595_s15 + $0x10] sm:$0xff]   ;;  %v2224_v34 = vld [vmem:[%s3891_s20 + $0x1c] sm:$0xf] }
  0x41   : > { %3096 = vmatprep.subr.bf16.mxu0 %v3376_v2 }
  0x42   : > { %v1476_v27 = vsel %vm991_vm3, %v1472_v30, %v3621_v4  ;;  %v3268_v4 = vld [vmem:[%s3595_s15 + $0x20] sm:$0xff]   ;;  %v2233_v30 = vld [vmem:[%s3897_s27 + $0x18] sm:$0xf]  ;;  %s3378_s15 = smov 4  }
  0x45   : > { %3015 = vmatmul.mubr.msk.bf16.gmra.mrb[24].mxu0 %vm724_vm2, %v1008_v38 }
  0x46   : > { %3037 = vmatmul.mubr.msk.bf16.gmra.mrb[24].mxu1 %vm724_vm2, %v3259_v39  ;;  %3018 = vmatprep.mubr.msk.bf16.mxu0 %vm3377_vm1, %v3376_v2  ;;  %v2228_v39 = vld [vmem:[%s3897_s27 + $0x4] sm:$0xf] }
  0x47   : > { %3040 = vmatprep.mubr.msk.bf16.mxu1 %vm3377_vm1, %v3376_v2 }
  0x4d   : > { %3019 = vmatmul.mubr.msk.bf16.gmra.mrb[28].mxu0 %vm724_vm2, %v1015_v53  ;;  %v2199_v53 = vld [vmem:[%s3885_s17 + $0x8] sm:$0xf] }
  0x4e   : > { %3041 = vmatmul.mubr.msk.bf16.gmra.mrb[28].mxu1 %vm724_vm2, %v3260_v55  ;;  %3022 = vmatprep.mubr.msk.bf16.mxu0 %vm3377_vm1, %v3376_v2  ;;  %v2200_v55 = vld [vmem:[%s3885_s17 + $0xc] sm:$0xf] }
  0x4f   : > { %3044 = vmatprep.mubr.msk.bf16.mxu1 %vm3377_vm1, %v3376_v2 }
  0x55   : > { %3023 = vmatmul.mubr.msk.bf16.gmra.mrb[32].mxu0 %vm724_vm2, %v1022_v5  ;;  %v2210_v5 = vmax.bf16 %v2200_v55, %v2190_v36 }
  0x56   : > { %3045 = vmatmul.mubr.msk.bf16.gmra.mrb[32].mxu1 %vm724_vm2, %v3599_v56  ;;  %3026 = vmatprep.mubr.msk.bf16.mxu0 %vm3377_vm1, %v3376_v2  ;;  %v1461_v56 = vrot.slane %v1459_v6, 1  ;;  %v2201_v6 = vld [vmem:[%s3885_s17 + $0x10] sm:$0xf] }
  0x57   : > { %3048 = vmatprep.mubr.msk.bf16.mxu1 %vm3377_vm1, %v3376_v2  ;;  %v2250_v11 = vmax.bf16 %v2240_v7, %v2210_v5  ;;  %v2211_v49 = vmax.bf16 %v2201_v6, %v2191_v40 }
  0x58   : > { %v1465_v24 = vor.u32 %v1463_v22, %v1461_v56 }
  0x5a   : > { %v1469_v29 = vsel %vm991_vm3, %v1465_v24, %v1468_v1  ;;  %v2204_v24 = vld [vmem:[%s3885_s17 + $0x1c] sm:$0xf]  ;;  %v2223_v1 = vld [vmem:[%s3891_s20 + $0x18] sm:$0xf] }
  0x5d   : > { %3027 = vmatmul.mubr.msk.bf16.gmra.mrb[36].mxu0 %vm724_vm2, %v1030_v12  ;;  %v2192_v12 = vld [vmem:[%s3879_s14 + $0x14] sm:$0xf] }
  0x5e   : > { %3049 = vmatmul.mubr.msk.bf16.gmra.mrb[36].mxu1 %vm724_vm2, %v3602_v57  ;;  %3054 = vmatprep.mubr.msk.bf16.mxu0 %vm3377_vm1, %v3376_v2  ;;  %v1462_v57 = vsel %vm991_vm3, %v1458_v17, %v1461_v56  ;;  %v2231_v56 = vld [vmem:[%s3897_s27 + $0x10] sm:$0xf]  ;;  %v2232_v17 = vld [vmem:[%s3897_s27 + $0x14] sm:$0xf]  ;;  %v2212_v21 = vmax.bf16 %v2202_v48, %v2192_v12 }
  0x5f   : > { %3076 = vmatprep.mubr.msk.bf16.mxu1 %vm3377_vm1, %v3376_v2 }
  0x65   : > { %3055 = vmatmul.mubr.msk.bf16.vlgmr.msra.gmra.mrb[40].mxu0 %vm724_vm2, %v3264_v19 }
  0x66   : > { %3077 = vmatmul.mubr.msk.bf16.vlgmr.msra.gmra.mrb[40].mxu1 %vm724_vm2, %v1462_v57  ;;  %3058 = vmatprep.mubr.msk.bf16.mxu0 %vm3377_vm1, %v3376_v2  ;;  %v2241_v57 = vmax.bf16 %v2231_v56, %v2221_v14 }
  0x67   : > { %3119 = vmatpush3.bf16.msra.mxu1 %v1860_v62  ;;  %3080 = vmatprep.mubr.msk.bf16.mxu1 %vm3377_vm1, %v3376_v2  ;;  %v2194_v62 = vld [vmem:[%s3879_s14 + $0x1c] sm:$0xf] }
  0x68   : > { %3097 = vmatpush3.bf16.msra.mxu0 %v1683_v10  ;;  %3162 = vmatprep.subr.bf16.mxu1 %v3376_v2  ;;  %v2203_v10 = vld [vmem:[%s3885_s17 + $0x18] sm:$0xf] }
  0x69   : > { %3140 = vmatprep.subr.bf16.mxu0 %v3376_v2 }
  0x6d   : > { %3059 = vmatmul.mubr.msk.bf16.gmra.mrb[44].mxu0 %vm724_vm2, %v3265_v26  ;;  %v2251_v26 = vmax.bf16 %v2241_v57, %v2211_v49 }
  0x6e   : > { %3081 = vmatmul.mubr.msk.bf16.gmra.mrb[44].mxu1 %vm724_vm2, %v1469_v29  ;;  %3062 = vmatprep.mubr.msk.bf16.mxu0 %vm3377_vm1, %v3376_v2 }
  0x6f   : > { %3084 = vmatprep.mubr.msk.bf16.mxu1 %vm3377_vm1, %v3376_v2 }
  0x75   : > { %3063 = vmatmul.mubr.msk.bf16.gmra.mrb[48].mxu0 %vm724_vm2, %v3266_v32  ;;  %v2234_v32 = vld [vmem:[%s3897_s27 + $0x1c] sm:$0xf] }
  0x76   : > { %3085 = vmatmul.mubr.msk.bf16.gmra.mrb[48].mxu1 %vm724_vm2, %v1476_v27  ;;  %3066 = vmatprep.mubr.msk.bf16.mxu0 %vm3377_vm1, %v3376_v2  ;;  %v2214_v27 = vmax.bf16 %v2204_v24, %v2194_v62 }
  0x77   : > { %3088 = vmatprep.mubr.msk.bf16.mxu1 %vm3377_vm1, %v3376_v2 }
  0x7d   : > { %3067 = vmatmul.mubr.msk.bf16.gmra.mrb[52].mxu0 %vm724_vm2, %v3267_v33  ;;  %v2243_v33 = vmax.bf16 %v2233_v30, %v2223_v1 }
  0x7e   : > { %3089 = vmatmul.mubr.msk.bf16.gmra.mrb[52].mxu1 %vm724_vm2, %v3636_v20  ;;  %3070 = vmatprep.mubr.msk.bf16.mxu0 %vm3377_vm1, %v3376_v2  ;;  %v2257_v20 = vld [vmem:[%s4218_s10] sm:$0x1] }
  0x7f   : > { %3092 = vmatprep.mubr.msk.bf16.mxu1 %vm3377_vm1, %v3376_v2  ;;  %v2306_v38 = vsel %vm740_vm0, %v2257_v20, 0 }
  0x85   : > { %3071 = vmatmul.mubr.msk.bf16.gmra.mrb[56].mxu0 %vm724_vm2, %v3268_v4  ;;  %v2244_v4 = vmax.bf16 %v2234_v32, %v2224_v34 }
  0x86   : > { %3093 = vmatmul.mubr.msk.bf16.gmra.mrb[56].mxu1 %vm724_vm2, %v3651_v28  ;;  %3098 = vmatprep.mubr.msk.bf16.mxu0 %vm3377_vm1, %v3376_v2  ;;  %v1995_v28 = vsel %vm740_vm0, %v2844_v35, 0 }
  0x87   : > { %3120 = vmatprep.mubr.msk.bf16.mxu1 %vm3377_vm1, %v3376_v2 }
  0x8d   : > { %3099 = vmatmul.mubr.msk.bf16.vlgmr.msra.gmra.mrb[60].mxu0 %vm724_vm2, %v3645_v31  ;;  %v2188_v31 = vld [vmem:[%s3879_s14 + $0x4] sm:$0xf] }
  0x8e   : > { %3121 = vmatmul.mubr.msk.bf16.vlgmr.msra.gmra.mrb[60].mxu1 %vm724_vm2, %v3586_v51  ;;  %3102 = vmatprep.mubr.msk.bf16.mxu0 %vm3377_vm1, %v3376_v2  ;;  %v2187_v51 = vld [vmem:[%s3879_s14] sm:$0xf] }
  0x8f   : > { %3163 = vmatpush3.bf16.msra.mxu1 %v2306_v38  ;;  %3124 = vmatprep.mubr.msk.bf16.mxu1 %vm3377_vm1, %v3376_v2  ;;  %v2254_v38 = vmax.bf16 %v2244_v4, %v2214_v27 }
  0x90   : > { %3141 = vmatpush3.bf16.msra.mxu0 %v1995_v28  ;;  %v2195_v28 = vld [vmem:[%s3879_s14 + $0x20] sm:$0xf] }
  0x95   : > { %3103 = vmatmul.mubr.msk.bf16.gmra.mrb[64].mxu0 %vm724_vm2, %v3661_v45  ;;  %v2197_v45 = vld [vmem:[%s3885_s17] sm:$0xf] }
  0x96   : > { %3125 = vmatmul.mubr.msk.bf16.gmra.mrb[64].mxu1 %vm724_vm2, %v3664_v46  ;;  %3106 = vmatprep.mubr.msk.bf16.mxu0 %vm3377_vm1, %v3376_v2  ;;  %v2198_v46 = vld [vmem:[%s3885_s17 + $0x4] sm:$0xf]  ;;  %v2207_v44 = vmax.bf16 %v2197_v45, %v2187_v51 }
  0x97   : > { %3128 = vmatprep.mubr.msk.bf16.mxu1 %vm3377_vm1, %v3376_v2  ;;  %v2196_v51 = vld [vmem:[%s3879_s14 + $0x24] sm:$0xf] }
  0x98   : > { %v2206_v45 = vld [vmem:[%s3885_s17 + $0x24] sm:$0xf] }
  0x9d   : > { %3107 = vmatmul.mubr.msk.bf16.gmra.mrb[68].mxu0 %vm724_vm2, %v3669_v52  ;;  %v2217_v52 = vld [vmem:[%s3891_s20] sm:$0xf] }
  0x9e   : > { %3129 = vmatmul.mubr.msk.bf16.gmra.mrb[68].mxu1 %vm724_vm2, %v3678_v9  ;;  %3110 = vmatprep.mubr.msk.bf16.mxu0 %vm3377_vm1, %v3376_v2  ;;  %v2218_v9 = vld [vmem:[%s3891_s20 + $0x4] sm:$0xf] }
  0x9f   : > { %3132 = vmatprep.mubr.msk.bf16.mxu1 %vm3377_vm1, %v3376_v2  ;;  %v2238_v42 = vmax.bf16 %v2228_v39, %v2218_v9  ;;  %v2235_v9 = vld [vmem:[%s3897_s27 + $0x20] sm:$0xf] }
  0xa5   : > { %3111 = vmatmul.mubr.msk.bf16.gmra.mrb[72].mxu0 %vm724_vm2, %v3681_v13  ;;  %v2227_v13 = vld [vmem:[%s3897_s27] sm:$0xf] }
  0xa6   : > { %3133 = vmatmul.mubr.msk.bf16.gmra.mrb[72].mxu1 %vm724_vm2, %v3686_v18  ;;  %3114 = vmatprep.mubr.msk.bf16.mxu0 %vm3377_vm1, %v3376_v2  ;;  %v2208_v18 = vmax.bf16 %v2198_v46, %v2188_v31  ;;  %v2237_v47 = vmax.bf16 %v2227_v13, %v2217_v52  ;;  %v2205_v31 = vld [vmem:[%s3885_s17 + $0x20] sm:$0xf]  ;;  %v2226_v52 = vld [vmem:[%s3891_s20 + $0x24] sm:$0xf]  ;;  %s4159_s17 = scalar_lea.vmem %s4220_s12, %s3867_s13 }
  0xa7   : > { %3136 = vmatprep.mubr.msk.bf16.mxu1 %vm3377_vm1, %v3376_v2  ;;  %v2225_v46 = vld [vmem:[%s3891_s20 + $0x20] sm:$0xf]  ;;  %v2236_v13 = vld [vmem:[%s3897_s27 + $0x24] sm:$0xf] }
  0xa8   : > { %v2247_v59 = vmax.bf16 %v2237_v47, %v2207_v44  ;;  %v2248_v60 = vmax.bf16 %v2238_v42, %v2208_v18  ;;  %v2216_v44 = vmax.bf16 %v2206_v45, %v2196_v51  ;;  %v2245_v18 = vmax.bf16 %v2235_v9, %v2225_v46 }
  0xa9   : > { %v2246_v47 = vmax.bf16 %v2236_v13, %v2226_v52 }
  0xaa   : > { %v2862_v8 = vcombine.low %v2247_v59, %v2248_v60 }
  0xad   : > { %3115 = vmatmul.mubr.msk.bf16.gmra.mrb[76].mxu0 %vm724_vm2, %v3698_v23  ;;  %v2209_v23 = vmax.bf16 %v2199_v53, %v2189_v50  ;;  %v2256_v50 = vmax.bf16 %v2246_v47, %v2216_v44 }
  0xae   : > { %3137 = vmatmul.mubr.msk.bf16.gmra.mrb[76].mxu1 %vm724_vm2, %v3704_v15  ;;  %3142 = vmatprep.mubr.msk.bf16.mxu0 %vm3377_vm1, %v3376_v2  ;;  %v2239_v15 = vmax.bf16 %v2229_v43, %v2219_v58 }
  0xaf   : > { %3164 = vmatprep.mubr.msk.bf16.mxu1 %vm3377_vm1, %v3376_v2 }
  0xb0   : > { %v2249_v41 = vmax.bf16 %v2239_v15, %v2209_v23 }
  0xb2   : > { %v2863_v19 = vcombine.low %v2249_v41, %v2250_v11 }
  0xb5   : > { %3143 = vmatmul.mubr.msk.bf16.vlgmr.msra.gmra.mrb[80].mxu0 %vm724_vm2, %v3708_v16  ;;  %v2222_v16 = vld [vmem:[%s3891_s20 + $0x14] sm:$0xf] }
  0xb6   : > { %3165 = vmatmul.mubr.msk.bf16.vlgmr.msra.gmra.mrb[80].mxu1 %vm724_vm2, %v2862_v8  ;;  %3146 = vmatprep.mubr.msk.bf16.mxu0 %vm3377_vm1, %v3376_v2  ;;  %v2242_v22 = vmax.bf16 %v2232_v17, %v2222_v16 }
  0xb7   : > { %3168 = vmatprep.mubr.msk.bf16.mxu1 %vm3377_vm1, %v3376_v2 }
  0xb8   : > { %v2252_v29 = vmax.bf16 %v2242_v22, %v2212_v21 }
  0xba   : > { %v2864_v20 = vcombine.low %v2251_v26, %v2252_v29 }
  0xbd   : > { %3147 = vmatmul.mubr.msk.bf16.gmra.mrb[84].mxu0 %vm724_vm2, %v3714_v61  ;;  %v2213_v61 = vmax.bf16 %v2203_v10, %v2193_v25 }
  0xbe   : > { %3169 = vmatmul.mubr.msk.bf16.gmra.mrb[84].mxu1 %vm724_vm2, %v2863_v19  ;;  %3150 = vmatprep.mubr.msk.bf16.mxu0 %vm3377_vm1, %v3376_v2 }
  0xbf   : > { %3172 = vmatprep.mubr.msk.bf16.mxu1 %vm3377_vm1, %v3376_v2  ;;  %v2253_v35 = vmax.bf16 %v2243_v33, %v2213_v61 }
  0xc1   : > { %v2865_v39 = vcombine.low %v2253_v35, %v2254_v38 }
  0xc5   : > { %3151 = vmatmul.mubr.msk.bf16.gmra.mrb[88].mxu0 %vm724_vm2, %v3738_v37  ;;  %v2215_v37 = vmax.bf16 %v2205_v31, %v2195_v28 }
  0xc6   : > { %3173 = vmatmul.mubr.msk.bf16.gmra.mrb[88].mxu1 %vm724_vm2, %v2864_v20  ;;  %3154 = vmatprep.mubr.msk.bf16.mxu0 %vm3377_vm1, %v3376_v2 }
  0xc7   : > { %3176 = vmatprep.mubr.msk.bf16.mxu1 %vm3377_vm1, %v3376_v2  ;;  %v2255_v42 = vmax.bf16 %v2245_v18, %v2215_v37 }
  0xc9   : > { %v2866_v36 = vcombine.low %v2255_v42, %v2256_v50 }
  0xcd   : > { %3155 = vmatmul.mubr.msk.bf16.gmra.mrb[92].mxu0 %vm724_vm2, %v3752_v54 }
  0xce   : > { %3177 = vmatmul.mubr.msk.bf16.gmra.mrb[92].mxu1 %vm724_vm2, %v2865_v39  ;;  %3158 = vmatprep.mubr.msk.bf16.mxu0 %vm3377_vm1, %v3376_v2 }
  0xcf   : > { %3180 = vmatprep.mubr.msk.bf16.mxu1 %vm3377_vm1, %v3376_v2 }
  0xd5   : > { %3159 = vmatmul.mubr.msk.bf16.gmra.mrb[96].mxu0 %vm724_vm2, %v3768_v3 }
  0xd6   : > { %3181 = vmatmul.mubr.msk.bf16.gmra.mrb[96].mxu1 %vm724_vm2, %v2866_v36 }
  0xe8   : > { %v778_v53 = vpop.f32.mrb[0].mxu0 }
  0xe9   : > { %818 = vst.msk [vmem:[#allocation2] sm:$0xff] %vm817_vm5, %v778_v53  ;;  %v917_v54 = vpop.f32.mrb[0].mxu1  ;;  %v2968_v55 = vpop.f32.mrb[1].mxu0 }
  0xea   : > { %v2990_v58 = vpop.f32.mrb[1].mxu1  ;;  %v781_v59 = vpop.f32.mrb[2].mxu0 }
  0xeb   : > { %819 = vst.msk [vmem:[#allocation2 + $0x8] sm:$0xff] %vm817_vm5, %v781_v59  ;;  %v920_v60 = vpop.f32.mrb[2].mxu1  ;;  %v2969_v63 = vpop.f32.mrb[3].mxu0 }
  0xec   : > { %v2991_v43 = vpop.f32.mrb[3].mxu1 }
  0xf0   : > { %v828_v2 = vld [vmem:[#allocation2] sm:$0xff]  ;;  %v786_v0 = vpop.f32.mrb[4].mxu0 }
  0xf1   : > { %v956_v23 = vadd.f32 %v917_v54, %v828_v2  ;;  %820 = vst.msk [vmem:[#allocation2 + $0x10] sm:$0xff] %vm817_vm5, %v786_v0  ;;  %v925_v3 = vpop.f32.mrb[4].mxu1  ;;  %v2972_v5 = vpop.f32.mrb[5].mxu0 }
  0xf2   : > { %v829_v15 = vld [vmem:[#allocation2 + $0x8] sm:$0xff]  ;;  %v2994_v7 = vpop.f32.mrb[5].mxu1  ;;  %v789_v8 = vpop.f32.mrb[6].mxu0 }
  0xf3   : > { %966 = vst.msk [vmem:[#allocation2] sm:$0xff] %vm817_vm5, %v956_v23  ;;  %v957_v41 = vadd.f32 %v920_v60, %v829_v15  ;;  %821 = vst.msk [vmem:[#allocation2 + $0x18] sm:$0xff] %vm817_vm5, %v789_v8  ;;  %v928_v11 = vpop.f32.mrb[6].mxu1  ;;  %v2973_v40 = vpop.f32.mrb[7].mxu0 }
  0xf4   : > { %v2995_v12 = vpop.f32.mrb[7].mxu1 }
  0xf5   : > { %967 = vst.msk [vmem:[#allocation2 + $0x8] sm:$0xff] %vm817_vm5, %v957_v41 }
  0xf8   : > { %v830_v6 = vld [vmem:[#allocation2 + $0x10] sm:$0xff]  ;;  %v794_v48 = vpop.f32.mrb[8].mxu0 }
  0xf9   : > { %v958_v14 = vadd.f32 %v925_v3, %v830_v6  ;;  %822 = vst.msk [vmem:[#allocation2 + $0x20] sm:$0xff] %vm817_vm5, %v794_v48  ;;  %v933_v16 = vpop.f32.mrb[8].mxu1  ;;  %v2976_v56 = vpop.f32.mrb[9].mxu0 }
  0xfa   : > { %v831_v17 = vld [vmem:[#allocation2 + $0x18] sm:$0xff]  ;;  %v2998_v19 = vpop.f32.mrb[9].mxu1  ;;  %v797_v49 = vpop.f32.mrb[10].mxu0  ;;  %v976_v37 = vld [vmem:[#allocation2] sm:$0xff] }
  0xfb   : > { %968 = vst.msk [vmem:[#allocation2 + $0x10] sm:$0xff] %vm817_vm5, %v958_v14  ;;  %v959_v21 = vadd.f32 %v928_v11, %v831_v17  ;;  %823 = vst.msk [vmem:[#allocation2 + $0x28] sm:$0xff] %vm817_vm5, %v797_v49  ;;  %v936_v57 = vpop.f32.mrb[10].mxu1  ;;  %v2977_v22 = vpop.f32.mrb[11].mxu0 }
  0xfc   : > { %v2999_v25 = vpop.f32.mrb[11].mxu1  ;;  %v977_v54 = vld [vmem:[#allocation2 + $0x8] sm:$0xff] }
  0xfd   : > { %969 = vst.msk [vmem:[#allocation2 + $0x18] sm:$0xff] %vm817_vm5, %v959_v21 }
 0x100   : > { %v832_v62 = vld [vmem:[#allocation2 + $0x20] sm:$0xff]  ;;  %v802_v10 = vpop.f32.mrb[12].mxu0 }
 0x101   : > { %v960_v24 = vadd.f32 %v933_v16, %v832_v62  ;;  %824 = vst.msk [vmem:[#allocation2 + $0x30] sm:$0xff] %vm817_vm5, %v802_v10  ;;  %v941_v1 = vpop.f32.mrb[12].mxu1  ;;  %v2980_v26 = vpop.f32.mrb[13].mxu0 }
 0x102   : > { %v833_v29 = vld [vmem:[#allocation2 + $0x28] sm:$0xff]  ;;  %v3002_v34 = vpop.f32.mrb[13].mxu1  ;;  %v805_v30 = vpop.f32.mrb[14].mxu0  ;;  %v978_v2 = vld [vmem:[#allocation2 + $0x10] sm:$0xff] }
 0x103   : > { %970 = vst.msk [vmem:[#allocation2 + $0x20] sm:$0xff] %vm817_vm5, %v960_v24  ;;  %v961_v32 = vadd.f32 %v936_v57, %v833_v29  ;;  %825 = vst.msk [vmem:[#allocation2 + $0x38] sm:$0xff] %vm817_vm5, %v805_v30  ;;  %v944_v61 = vpop.f32.mrb[14].mxu1  ;;  %v2981_v27 = vpop.f32.mrb[15].mxu0 }
 0x104   : > { %v3003_v33 = vpop.f32.mrb[15].mxu1  ;;  %v979_v8 = vld [vmem:[#allocation2 + $0x18] sm:$0xff] }
 0x105   : > { %971 = vst.msk [vmem:[#allocation2 + $0x28] sm:$0xff] %vm817_vm5, %v961_v32 }
 0x108   : > { %v834_v4 = vld [vmem:[#allocation2 + $0x30] sm:$0xff]  ;;  %v810_v20 = vpop.f32.mrb[16].mxu0 }
 0x109   : > { %v962_v35 = vadd.f32 %v941_v1, %v834_v4  ;;  %826 = vst.msk [vmem:[#allocation2 + $0x40] sm:$0xff] %vm817_vm5, %v810_v20  ;;  %v949_v38 = vpop.f32.mrb[16].mxu1  ;;  %v2984_v28 = vpop.f32.mrb[17].mxu0 }
 0x10a   : > { %v835_v51 = vld [vmem:[#allocation2 + $0x38] sm:$0xff]  ;;  %v3006_v31 = vpop.f32.mrb[17].mxu1  ;;  %v813_v45 = vpop.f32.mrb[18].mxu0  ;;  %v980_v56 = vld [vmem:[#allocation2 + $0x20] sm:$0xff] }
 0x10b   : > { %972 = vst.msk [vmem:[#allocation2 + $0x30] sm:$0xff] %vm817_vm5, %v962_v35  ;;  %v963_v46 = vadd.f32 %v944_v61, %v835_v51  ;;  %827 = vst.msk [vmem:[#allocation2 + $0x48] sm:$0xff] %vm817_vm5, %v813_v45  ;;  %v952_v52 = vpop.f32.mrb[18].mxu1  ;;  %v2985_v9 = vpop.f32.mrb[19].mxu0 }
 0x10c   : > { %v3007_v13 = vpop.f32.mrb[19].mxu1  ;;  %v981_v25 = vld [vmem:[#allocation2 + $0x28] sm:$0xff] }
 0x10d   : > { %973 = vst.msk [vmem:[#allocation2 + $0x38] sm:$0xff] %vm817_vm5, %v963_v46 }
 0x110   : > { %v836_v39 = vld [vmem:[#allocation2 + $0x40] sm:$0xff]  ;;  %v1083_v44 = vpop.f32.mrb[20].mxu0 }
 0x111   : > { %v964_v18 = vadd.f32 %v949_v38, %v836_v39  ;;  %v1122_v47 = vadd.f32 %v1083_v44, %v976_v37  ;;  %v1231_v42 = vpop.f32.mrb[20].mxu1  ;;  %v3012_v50 = vpop.f32.mrb[21].mxu0 }
 0x112   : > { %v837_v36 = vld [vmem:[#allocation2 + $0x48] sm:$0xff]  ;;  %v3034_v53 = vpop.f32.mrb[21].mxu1  ;;  %v1086_v55 = vpop.f32.mrb[22].mxu0  ;;  %v982_v32 = vld [vmem:[#allocation2 + $0x30] sm:$0xff] }
 0x113   : > { %974 = vst.msk [vmem:[#allocation2 + $0x40] sm:$0xff] %vm817_vm5, %v964_v18  ;;  %v965_v58 = vadd.f32 %v952_v52, %v837_v36  ;;  %1132 = vst.msk [vmem:[#allocation2] sm:$0xff] %vm817_vm5, %v1122_v47  ;;  %v1123_v59 = vadd.f32 %v1086_v55, %v977_v54  ;;  %v1234_v60 = vpop.f32.mrb[22].mxu1  ;;  %v3013_v63 = vpop.f32.mrb[23].mxu0 }
 0x114   : > { %v3035_v43 = vpop.f32.mrb[23].mxu1  ;;  %v983_v38 = vld [vmem:[#allocation2 + $0x38] sm:$0xff] }
 0x115   : > { %975 = vst.msk [vmem:[#allocation2 + $0x48] sm:$0xff] %vm817_vm5, %v965_v58  ;;  %1133 = vst.msk [vmem:[#allocation2 + $0x8] sm:$0xff] %vm817_vm5, %v1123_v59 }
 0x118   : > { %v1091_v0 = vpop.f32.mrb[24].mxu0 }
 0x119   : > { %v1124_v23 = vadd.f32 %v1091_v0, %v978_v2  ;;  %v1239_v3 = vpop.f32.mrb[24].mxu1  ;;  %v3016_v5 = vpop.f32.mrb[25].mxu0 }
 0x11a   : > { %v1142_v15 = vld [vmem:[#allocation2] sm:$0xff]  ;;  %v3038_v7 = vpop.f32.mrb[25].mxu1  ;;  %v1094_v41 = vpop.f32.mrb[26].mxu0 }
 0x11b   : > { %v1270_v11 = vadd.f32 %v1231_v42, %v1142_v15  ;;  %1134 = vst.msk [vmem:[#allocation2 + $0x10] sm:$0xff] %vm817_vm5, %v1124_v23  ;;  %v1125_v40 = vadd.f32 %v1094_v41, %v979_v8  ;;  %v1242_v12 = vpop.f32.mrb[26].mxu1  ;;  %v3017_v6 = vpop.f32.mrb[27].mxu0  ;;  %v984_v39 = vld [vmem:[#allocation2 + $0x40] sm:$0xff] }
 0x11c   : > { %v1143_v48 = vld [vmem:[#allocation2 + $0x8] sm:$0xff]  ;;  %v3039_v14 = vpop.f32.mrb[27].mxu1 }
 0x11d   : > { %1280 = vst.msk [vmem:[#allocation2] sm:$0xff] %vm817_vm5, %v1270_v11  ;;  %v1271_v16 = vadd.f32 %v1234_v60, %v1143_v48  ;;  %1135 = vst.msk [vmem:[#allocation2 + $0x18] sm:$0xff] %vm817_vm5, %v1125_v40  ;;  %v985_v36 = vld [vmem:[#allocation2 + $0x48] sm:$0xff] }
 0x11f   : > { %1281 = vst.msk [vmem:[#allocation2 + $0x8] sm:$0xff] %vm817_vm5, %v1271_v16 }
 0x120   : > { %v1099_v17 = vpop.f32.mrb[28].mxu0 }
 0x121   : > { %v1126_v19 = vadd.f32 %v1099_v17, %v980_v56  ;;  %v1247_v49 = vpop.f32.mrb[28].mxu1  ;;  %v3020_v21 = vpop.f32.mrb[29].mxu0 }
 0x122   : > { %v1144_v57 = vld [vmem:[#allocation2 + $0x10] sm:$0xff]  ;;  %v3042_v22 = vpop.f32.mrb[29].mxu1  ;;  %v1102_v62 = vpop.f32.mrb[30].mxu0 }
 0x123   : > { %v1272_v10 = vadd.f32 %v1239_v3, %v1144_v57  ;;  %1136 = vst.msk [vmem:[#allocation2 + $0x20] sm:$0xff] %vm817_vm5, %v1126_v19  ;;  %v1127_v24 = vadd.f32 %v1102_v62, %v981_v25  ;;  %v1250_v1 = vpop.f32.mrb[30].mxu1  ;;  %v3021_v26 = vpop.f32.mrb[31].mxu0 }
 0x124   : > { %v1145_v29 = vld [vmem:[#allocation2 + $0x18] sm:$0xff]  ;;  %v3043_v34 = vpop.f32.mrb[31].mxu1  ;;  %v1290_v2 = vld [vmem:[#allocation2] sm:$0xff] }
 0x125   : > { %1282 = vst.msk [vmem:[#allocation2 + $0x10] sm:$0xff] %vm817_vm5, %v1272_v10  ;;  %v1273_v30 = vadd.f32 %v1242_v12, %v1145_v29  ;;  %1137 = vst.msk [vmem:[#allocation2 + $0x28] sm:$0xff] %vm817_vm5, %v1127_v24 }
 0x126   : > { %v1291_v8 = vld [vmem:[#allocation2 + $0x8] sm:$0xff] }
 0x127   : > { %1283 = vst.msk [vmem:[#allocation2 + $0x18] sm:$0xff] %vm817_vm5, %v1273_v30 }
 0x128   : > { %v1107_v61 = vpop.f32.mrb[32].mxu0 }
 0x129   : > { %v1128_v27 = vadd.f32 %v1107_v61, %v982_v32  ;;  %v1255_v33 = vpop.f32.mrb[32].mxu1  ;;  %v3024_v4 = vpop.f32.mrb[33].mxu0 }
 0x12a   : > { %v1146_v20 = vld [vmem:[#allocation2 + $0x20] sm:$0xff]  ;;  %v3046_v35 = vpop.f32.mrb[33].mxu1  ;;  %v1110_v28 = vpop.f32.mrb[34].mxu0 }
 0x12b   : > { %v1274_v51 = vadd.f32 %v1247_v49, %v1146_v20  ;;  %1138 = vst.msk [vmem:[#allocation2 + $0x30] sm:$0xff] %vm817_vm5, %v1128_v27  ;;  %v1129_v31 = vadd.f32 %v1110_v28, %v983_v38  ;;  %v1258_v45 = vpop.f32.mrb[34].mxu1  ;;  %v3025_v46 = vpop.f32.mrb[35].mxu0 }
 0x12c   : > { %v1147_v52 = vld [vmem:[#allocation2 + $0x28] sm:$0xff]  ;;  %v3047_v9 = vpop.f32.mrb[35].mxu1  ;;  %v1292_v56 = vld [vmem:[#allocation2 + $0x10] sm:$0xff] }
 0x12d   : > { %1284 = vst.msk [vmem:[#allocation2 + $0x20] sm:$0xff] %vm817_vm5, %v1274_v51  ;;  %v1275_v13 = vadd.f32 %v1250_v1, %v1147_v52  ;;  %1139 = vst.msk [vmem:[#allocation2 + $0x38] sm:$0xff] %vm817_vm5, %v1129_v31 }
 0x12e   : > { %v1293_v25 = vld [vmem:[#allocation2 + $0x18] sm:$0xff] }
 0x12f   : > { %1285 = vst.msk [vmem:[#allocation2 + $0x28] sm:$0xff] %vm817_vm5, %v1275_v13 }
 0x130   : > { %v1115_v37 = vpop.f32.mrb[36].mxu0 }
 0x131   : > { %v1130_v44 = vadd.f32 %v1115_v37, %v984_v39  ;;  %v1263_v18 = vpop.f32.mrb[36].mxu1  ;;  %v3028_v47 = vpop.f32.mrb[37].mxu0 }
 0x132   : > { %v1148_v42 = vld [vmem:[#allocation2 + $0x30] sm:$0xff]  ;;  %v3050_v50 = vpop.f32.mrb[37].mxu1  ;;  %v1118_v53 = vpop.f32.mrb[38].mxu0 }
 0x133   : > { %v1276_v54 = vadd.f32 %v1255_v33, %v1148_v42  ;;  %1140 = vst.msk [vmem:[#allocation2 + $0x40] sm:$0xff] %vm817_vm5, %v1130_v44  ;;  %v1131_v55 = vadd.f32 %v1118_v53, %v985_v36  ;;  %v1266_v58 = vpop.f32.mrb[38].mxu1  ;;  %v3029_v59 = vpop.f32.mrb[39].mxu0 }
 0x134   : > { %v1149_v60 = vld [vmem:[#allocation2 + $0x38] sm:$0xff]  ;;  %v3051_v63 = vpop.f32.mrb[39].mxu1  ;;  %v1294_v32 = vld [vmem:[#allocation2 + $0x20] sm:$0xff] }
 0x135   : > { %1286 = vst.msk [vmem:[#allocation2 + $0x30] sm:$0xff] %vm817_vm5, %v1276_v54  ;;  %v1277_v43 = vadd.f32 %v1258_v45, %v1149_v60  ;;  %1141 = vst.msk [vmem:[#allocation2 + $0x48] sm:$0xff] %vm817_vm5, %v1131_v55 }
 0x136   : > { %v1295_v38 = vld [vmem:[#allocation2 + $0x28] sm:$0xff] }
 0x137   : > { %1287 = vst.msk [vmem:[#allocation2 + $0x38] sm:$0xff] %vm817_vm5, %v1277_v43 }
 0x138   : > { %v1379_v0 = vpop.f32.mrb[40].mxu0 }
 0x139   : > { %v1418_v23 = vadd.f32 %v1379_v0, %v1290_v2  ;;  %v1544_v3 = vpop.f32.mrb[40].mxu1  ;;  %v3056_v5 = vpop.f32.mrb[41].mxu0 }
 0x13a   : > { %v1150_v15 = vld [vmem:[#allocation2 + $0x40] sm:$0xff]  ;;  %v3078_v7 = vpop.f32.mrb[41].mxu1  ;;  %v1382_v41 = vpop.f32.mrb[42].mxu0 }
 0x13b   : > { %v1278_v11 = vadd.f32 %v1263_v18, %v1150_v15  ;;  %1428 = vst.msk [vmem:[#allocation2] sm:$0xff] %vm817_vm5, %v1418_v23  ;;  %v1419_v40 = vadd.f32 %v1382_v41, %v1291_v8  ;;  %v1547_v12 = vpop.f32.mrb[42].mxu1  ;;  %v3057_v6 = vpop.f32.mrb[43].mxu0 }
 0x13c   : > { %v1151_v48 = vld [vmem:[#allocation2 + $0x48] sm:$0xff]  ;;  %v3079_v14 = vpop.f32.mrb[43].mxu1  ;;  %v1296_v39 = vld [vmem:[#allocation2 + $0x30] sm:$0xff] }
 0x13d   : > { %1288 = vst.msk [vmem:[#allocation2 + $0x40] sm:$0xff] %vm817_vm5, %v1278_v11  ;;  %v1279_v16 = vadd.f32 %v1266_v58, %v1151_v48  ;;  %1429 = vst.msk [vmem:[#allocation2 + $0x8] sm:$0xff] %vm817_vm5, %v1419_v40 }
 0x13e   : > { %v1297_v36 = vld [vmem:[#allocation2 + $0x38] sm:$0xff] }
 0x13f   : > { %1289 = vst.msk [vmem:[#allocation2 + $0x48] sm:$0xff] %vm817_vm5, %v1279_v16 }
 0x140   : > { %v1387_v17 = vpop.f32.mrb[44].mxu0 }
 0x141   : > { %v1420_v19 = vadd.f32 %v1387_v17, %v1292_v56  ;;  %v1552_v49 = vpop.f32.mrb[44].mxu1  ;;  %v3060_v21 = vpop.f32.mrb[45].mxu0 }
 0x142   : > { %v1438_v57 = vld [vmem:[#allocation2] sm:$0xff]  ;;  %v3082_v22 = vpop.f32.mrb[45].mxu1  ;;  %v1390_v62 = vpop.f32.mrb[46].mxu0 }
 0x143   : > { %v1583_v10 = vadd.f32 %v1544_v3, %v1438_v57  ;;  %1430 = vst.msk [vmem:[#allocation2 + $0x10] sm:$0xff] %vm817_vm5, %v1420_v19  ;;  %v1421_v24 = vadd.f32 %v1390_v62, %v1293_v25  ;;  %v1555_v1 = vpop.f32.mrb[46].mxu1  ;;  %v3061_v26 = vpop.f32.mrb[47].mxu0 }
 0x144   : > { %v1439_v29 = vld [vmem:[#allocation2 + $0x8] sm:$0xff]  ;;  %v3083_v34 = vpop.f32.mrb[47].mxu1  ;;  %v1298_v2 = vld [vmem:[#allocation2 + $0x40] sm:$0xff] }
 0x145   : > { %1593 = vst.msk [vmem:[#allocation2] sm:$0xff] %vm817_vm5, %v1583_v10  ;;  %v1584_v30 = vadd.f32 %v1547_v12, %v1439_v29  ;;  %1431 = vst.msk [vmem:[#allocation2 + $0x18] sm:$0xff] %vm817_vm5, %v1421_v24 }
 0x146   : > { %v1299_v8 = vld [vmem:[#allocation2 + $0x48] sm:$0xff] }
 0x147   : > { %1594 = vst.msk [vmem:[#allocation2 + $0x8] sm:$0xff] %vm817_vm5, %v1584_v30 }
 0x148   : > { %v1395_v61 = vpop.f32.mrb[48].mxu0 }
 0x149   : > { %v1422_v27 = vadd.f32 %v1395_v61, %v1294_v32  ;;  %v1560_v33 = vpop.f32.mrb[48].mxu1  ;;  %v3064_v4 = vpop.f32.mrb[49].mxu0 }
 0x14a   : > { %v1440_v20 = vld [vmem:[#allocation2 + $0x10] sm:$0xff]  ;;  %v3086_v35 = vpop.f32.mrb[49].mxu1  ;;  %v1398_v28 = vpop.f32.mrb[50].mxu0 }
 0x14b   : > { %v1585_v51 = vadd.f32 %v1552_v49, %v1440_v20  ;;  %1432 = vst.msk [vmem:[#allocation2 + $0x20] sm:$0xff] %vm817_vm5, %v1422_v27  ;;  %v1423_v31 = vadd.f32 %v1398_v28, %v1295_v38  ;;  %v1563_v45 = vpop.f32.mrb[50].mxu1  ;;  %v3065_v46 = vpop.f32.mrb[51].mxu0 }
 0x14c   : > { %v1441_v52 = vld [vmem:[#allocation2 + $0x18] sm:$0xff]  ;;  %v3087_v9 = vpop.f32.mrb[51].mxu1  ;;  %v1603_v56 = vld [vmem:[#allocation2] sm:$0xff] }
 0x14d   : > { %1595 = vst.msk [vmem:[#allocation2 + $0x10] sm:$0xff] %vm817_vm5, %v1585_v51  ;;  %v1586_v13 = vadd.f32 %v1555_v1, %v1441_v52  ;;  %1433 = vst.msk [vmem:[#allocation2 + $0x28] sm:$0xff] %vm817_vm5, %v1423_v31 }
 0x14e   : > { %v1604_v25 = vld [vmem:[#allocation2 + $0x8] sm:$0xff] }
 0x14f   : > { %1596 = vst.msk [vmem:[#allocation2 + $0x18] sm:$0xff] %vm817_vm5, %v1586_v13 }
 0x150   : > { %v1403_v37 = vpop.f32.mrb[52].mxu0 }
 0x151   : > { %v1424_v44 = vadd.f32 %v1403_v37, %v1296_v39  ;;  %v1568_v18 = vpop.f32.mrb[52].mxu1  ;;  %v3068_v47 = vpop.f32.mrb[53].mxu0 }
 0x152   : > { %v1442_v42 = vld [vmem:[#allocation2 + $0x20] sm:$0xff]  ;;  %v3090_v50 = vpop.f32.mrb[53].mxu1  ;;  %v1406_v53 = vpop.f32.mrb[54].mxu0 }
 0x153   : > { %v1587_v54 = vadd.f32 %v1560_v33, %v1442_v42  ;;  %1434 = vst.msk [vmem:[#allocation2 + $0x30] sm:$0xff] %vm817_vm5, %v1424_v44  ;;  %v1425_v55 = vadd.f32 %v1406_v53, %v1297_v36  ;;  %v1571_v58 = vpop.f32.mrb[54].mxu1  ;;  %v3069_v59 = vpop.f32.mrb[55].mxu0 }
 0x154   : > { %v1443_v60 = vld [vmem:[#allocation2 + $0x28] sm:$0xff]  ;;  %v3091_v63 = vpop.f32.mrb[55].mxu1  ;;  %v1605_v32 = vld [vmem:[#allocation2 + $0x10] sm:$0xff] }
 0x155   : > { %1597 = vst.msk [vmem:[#allocation2 + $0x20] sm:$0xff] %vm817_vm5, %v1587_v54  ;;  %v1588_v43 = vadd.f32 %v1563_v45, %v1443_v60  ;;  %1435 = vst.msk [vmem:[#allocation2 + $0x38] sm:$0xff] %vm817_vm5, %v1425_v55 }
 0x156   : > { %v1606_v38 = vld [vmem:[#allocation2 + $0x18] sm:$0xff] }
 0x157   : > { %1598 = vst.msk [vmem:[#allocation2 + $0x28] sm:$0xff] %vm817_vm5, %v1588_v43 }
 0x158   : > { %v1411_v0 = vpop.f32.mrb[56].mxu0 }
 0x159   : > { %v1426_v23 = vadd.f32 %v1411_v0, %v1298_v2  ;;  %v1576_v3 = vpop.f32.mrb[56].mxu1  ;;  %v3072_v5 = vpop.f32.mrb[57].mxu0 }
 0x15a   : > { %v1444_v15 = vld [vmem:[#allocation2 + $0x30] sm:$0xff]  ;;  %v3094_v7 = vpop.f32.mrb[57].mxu1  ;;  %v1414_v41 = vpop.f32.mrb[58].mxu0 }
 0x15b   : > { %v1589_v11 = vadd.f32 %v1568_v18, %v1444_v15  ;;  %1436 = vst.msk [vmem:[#allocation2 + $0x40] sm:$0xff] %vm817_vm5, %v1426_v23  ;;  %v1427_v40 = vadd.f32 %v1414_v41, %v1299_v8  ;;  %v1579_v12 = vpop.f32.mrb[58].mxu1  ;;  %v3073_v6 = vpop.f32.mrb[59].mxu0 }
 0x15c   : > { %v1445_v48 = vld [vmem:[#allocation2 + $0x38] sm:$0xff]  ;;  %v3095_v14 = vpop.f32.mrb[59].mxu1  ;;  %v1607_v39 = vld [vmem:[#allocation2 + $0x20] sm:$0xff] }
 0x15d   : > { %1599 = vst.msk [vmem:[#allocation2 + $0x30] sm:$0xff] %vm817_vm5, %v1589_v11  ;;  %v1590_v16 = vadd.f32 %v1571_v58, %v1445_v48  ;;  %1437 = vst.msk [vmem:[#allocation2 + $0x48] sm:$0xff] %vm817_vm5, %v1427_v40 }
 0x15e   : > { %v1608_v36 = vld [vmem:[#allocation2 + $0x28] sm:$0xff] }
 0x15f   : > { %1600 = vst.msk [vmem:[#allocation2 + $0x38] sm:$0xff] %vm817_vm5, %v1590_v16 }
 0x160   : > { %v1719_v17 = vpop.f32.mrb[60].mxu0 }
 0x161   : > { %v1758_v19 = vadd.f32 %v1719_v17, %v1603_v56  ;;  %v1896_v49 = vpop.f32.mrb[60].mxu1  ;;  %v3100_v21 = vpop.f32.mrb[61].mxu0 }
 0x162   : > { %v1446_v57 = vld [vmem:[#allocation2 + $0x40] sm:$0xff]  ;;  %v3122_v22 = vpop.f32.mrb[61].mxu1  ;;  %v1722_v62 = vpop.f32.mrb[62].mxu0 }
 0x163   : > { %v1591_v10 = vadd.f32 %v1576_v3, %v1446_v57  ;;  %1768 = vst.msk [vmem:[#allocation2] sm:$0xff] %vm817_vm5, %v1758_v19  ;;  %v1759_v24 = vadd.f32 %v1722_v62, %v1604_v25  ;;  %v1899_v1 = vpop.f32.mrb[62].mxu1  ;;  %v3101_v26 = vpop.f32.mrb[63].mxu0 }
 0x164   : > { %v1447_v29 = vld [vmem:[#allocation2 + $0x48] sm:$0xff]  ;;  %v3123_v34 = vpop.f32.mrb[63].mxu1  ;;  %v1609_v2 = vld [vmem:[#allocation2 + $0x30] sm:$0xff] }
 0x165   : > { %1601 = vst.msk [vmem:[#allocation2 + $0x40] sm:$0xff] %vm817_vm5, %v1591_v10  ;;  %v1592_v30 = vadd.f32 %v1579_v12, %v1447_v29  ;;  %1769 = vst.msk [vmem:[#allocation2 + $0x8] sm:$0xff] %vm817_vm5, %v1759_v24 }
 0x166   : > { %v1610_v8 = vld [vmem:[#allocation2 + $0x38] sm:$0xff] }
 0x167   : > { %1602 = vst.msk [vmem:[#allocation2 + $0x48] sm:$0xff] %vm817_vm5, %v1592_v30 }
 0x168   : > { %v1727_v61 = vpop.f32.mrb[64].mxu0 }
 0x169   : > { %v1760_v27 = vadd.f32 %v1727_v61, %v1605_v32  ;;  %v1904_v33 = vpop.f32.mrb[64].mxu1  ;;  %v3104_v4 = vpop.f32.mrb[65].mxu0  ;;  %v4067_v32 = vld [vmem:[%s4219_s11] ss:$0 sm:$0xff] }
 0x16a   : > { %v1778_v20 = vld [vmem:[#allocation2] sm:$0xff]  ;;  %v3126_v35 = vpop.f32.mrb[65].mxu1  ;;  %v1730_v28 = vpop.f32.mrb[66].mxu0 }
 0x16b   : > { %v1935_v51 = vadd.f32 %v1896_v49, %v1778_v20  ;;  %1770 = vst.msk [vmem:[#allocation2 + $0x10] sm:$0xff] %vm817_vm5, %v1760_v27  ;;  %v1761_v31 = vadd.f32 %v1730_v28, %v1606_v38  ;;  %v1907_v45 = vpop.f32.mrb[66].mxu1  ;;  %v3105_v46 = vpop.f32.mrb[67].mxu0 }
 0x16c   : > { %v1779_v52 = vld [vmem:[#allocation2 + $0x8] sm:$0xff]  ;;  %v3127_v9 = vpop.f32.mrb[67].mxu1  ;;  %v1611_v56 = vld [vmem:[#allocation2 + $0x40] sm:$0xff] }
 0x16d   : > { %1945 = vst.msk [vmem:[#allocation2] sm:$0xff] %vm817_vm5, %v1935_v51  ;;  %v1936_v13 = vadd.f32 %v1899_v1, %v1779_v52  ;;  %1771 = vst.msk [vmem:[#allocation2 + $0x18] sm:$0xff] %vm817_vm5, %v1761_v31 }
 0x16e   : > { %v1612_v25 = vld [vmem:[#allocation2 + $0x48] sm:$0xff] }
 0x16f   : > { %1946 = vst.msk [vmem:[#allocation2 + $0x8] sm:$0xff] %vm817_vm5, %v1936_v13 }
 0x170   : > { %v1735_v37 = vpop.f32.mrb[68].mxu0 }
 0x171   : > { %v1762_v44 = vadd.f32 %v1735_v37, %v1607_v39  ;;  %v1912_v18 = vpop.f32.mrb[68].mxu1  ;;  %v3108_v47 = vpop.f32.mrb[69].mxu0 }
 0x172   : > { %v1780_v42 = vld [vmem:[#allocation2 + $0x10] sm:$0xff]  ;;  %v3130_v50 = vpop.f32.mrb[69].mxu1  ;;  %v1738_v53 = vpop.f32.mrb[70].mxu0 }
 0x173   : > { %v1937_v54 = vadd.f32 %v1904_v33, %v1780_v42  ;;  %1772 = vst.msk [vmem:[#allocation2 + $0x20] sm:$0xff] %vm817_vm5, %v1762_v44  ;;  %v1763_v55 = vadd.f32 %v1738_v53, %v1608_v36  ;;  %v1915_v58 = vpop.f32.mrb[70].mxu1  ;;  %v3109_v59 = vpop.f32.mrb[71].mxu0 }
 0x174   : > { %v1781_v60 = vld [vmem:[#allocation2 + $0x18] sm:$0xff]  ;;  %v3131_v63 = vpop.f32.mrb[71].mxu1  ;;  %v1955_v61 = vld [vmem:[#allocation2] sm:$0xff] }
 0x175   : > { %1947 = vst.msk [vmem:[#allocation2 + $0x10] sm:$0xff] %vm817_vm5, %v1937_v54  ;;  %v1938_v43 = vadd.f32 %v1907_v45, %v1781_v60  ;;  %1773 = vst.msk [vmem:[#allocation2 + $0x28] sm:$0xff] %vm817_vm5, %v1763_v55 }
 0x176   : > { %v1956_v51 = vld [vmem:[#allocation2 + $0x8] sm:$0xff] }
 0x177   : > { %1948 = vst.msk [vmem:[#allocation2 + $0x18] sm:$0xff] %vm817_vm5, %v1938_v43 }
 0x178   : > { %v1743_v0 = vpop.f32.mrb[72].mxu0 }
 0x179   : > { %v1764_v23 = vadd.f32 %v1743_v0, %v1609_v2  ;;  %v1920_v3 = vpop.f32.mrb[72].mxu1  ;;  %v3112_v5 = vpop.f32.mrb[73].mxu0 }
 0x17a   : > { %v1782_v15 = vld [vmem:[#allocation2 + $0x20] sm:$0xff]  ;;  %v3134_v7 = vpop.f32.mrb[73].mxu1  ;;  %v1746_v41 = vpop.f32.mrb[74].mxu0 }
 0x17b   : > { %v1939_v11 = vadd.f32 %v1912_v18, %v1782_v15  ;;  %1774 = vst.msk [vmem:[#allocation2 + $0x30] sm:$0xff] %vm817_vm5, %v1764_v23  ;;  %v1765_v40 = vadd.f32 %v1746_v41, %v1610_v8  ;;  %v1923_v12 = vpop.f32.mrb[74].mxu1  ;;  %v3113_v6 = vpop.f32.mrb[75].mxu0 }
 0x17c   : > { %v1783_v48 = vld [vmem:[#allocation2 + $0x28] sm:$0xff]  ;;  %v3135_v14 = vpop.f32.mrb[75].mxu1  ;;  %v1957_v42 = vld [vmem:[#allocation2 + $0x10] sm:$0xff] }
 0x17d   : > { %1949 = vst.msk [vmem:[#allocation2 + $0x20] sm:$0xff] %vm817_vm5, %v1939_v11  ;;  %v1940_v16 = vadd.f32 %v1915_v58, %v1783_v48  ;;  %1775 = vst.msk [vmem:[#allocation2 + $0x38] sm:$0xff] %vm817_vm5, %v1765_v40 }
 0x17e   : > { %v1958_v59 = vld [vmem:[#allocation2 + $0x18] sm:$0xff] }
 0x17f   : > { %1950 = vst.msk [vmem:[#allocation2 + $0x28] sm:$0xff] %vm817_vm5, %v1940_v16 }
 0x180   : > { %v1751_v17 = vpop.f32.mrb[76].mxu0 }
 0x181   : > { %v1766_v19 = vadd.f32 %v1751_v17, %v1611_v56  ;;  %v1928_v49 = vpop.f32.mrb[76].mxu1  ;;  %v3116_v21 = vpop.f32.mrb[77].mxu0 }
 0x182   : > { %v1784_v57 = vld [vmem:[#allocation2 + $0x30] sm:$0xff]  ;;  %v3138_v22 = vpop.f32.mrb[77].mxu1  ;;  %v1754_v62 = vpop.f32.mrb[78].mxu0 }
 0x183   : > { %v1941_v10 = vadd.f32 %v1920_v3, %v1784_v57  ;;  %1776 = vst.msk [vmem:[#allocation2 + $0x40] sm:$0xff] %vm817_vm5, %v1766_v19  ;;  %v1767_v24 = vadd.f32 %v1754_v62, %v1612_v25  ;;  %v1931_v1 = vpop.f32.mrb[78].mxu1  ;;  %v3117_v26 = vpop.f32.mrb[79].mxu0 }
 0x184   : > { %v1785_v29 = vld [vmem:[#allocation2 + $0x38] sm:$0xff]  ;;  %v3139_v34 = vpop.f32.mrb[79].mxu1  ;;  %v1959_v7 = vld [vmem:[#allocation2 + $0x20] sm:$0xff] }
 0x185   : > { %1951 = vst.msk [vmem:[#allocation2 + $0x30] sm:$0xff] %vm817_vm5, %v1941_v10  ;;  %v1942_v30 = vadd.f32 %v1923_v12, %v1785_v29  ;;  %1777 = vst.msk [vmem:[#allocation2 + $0x48] sm:$0xff] %vm817_vm5, %v1767_v24 }
 0x186   : > { %v1960_v16 = vld [vmem:[#allocation2 + $0x28] sm:$0xff] }
 0x187   : > { %1952 = vst.msk [vmem:[#allocation2 + $0x38] sm:$0xff] %vm817_vm5, %v1942_v30 }
 0x188   : > { %v2031_v27 = vpop.f32.mrb[80].mxu0 }
 0x189   : > { %v2070_v33 = vadd.f32 %v2031_v27, %v1955_v61  ;;  %v2342_v4 = vpop.f32.mrb[80].mxu1  ;;  %v3144_v20 = vpop.f32.mrb[81].mxu0 }
 0x18a   : > { %v1786_v35 = vld [vmem:[#allocation2 + $0x40] sm:$0xff]  ;;  %v4070_v38 = vadd.f32 %v4067_v32, %v2342_v4  ;;  %v3166_v28 = vpop.f32.mrb[81].mxu1  ;;  %v2034_v31 = vpop.f32.mrb[82].mxu0 }
 0x18b   : > { %v1943_v45 = vadd.f32 %v1928_v49, %v1786_v35  ;;  %2080 = vst.msk [vmem:[#allocation2] sm:$0xff] %vm817_vm5, %v2070_v33  ;;  %v2071_v46 = vadd.f32 %v2034_v31, %v1956_v51  ;;  %v2345_v52 = vpop.f32.mrb[82].mxu1  ;;  %v3145_v9 = vpop.f32.mrb[83].mxu0 }
 0x18c   : > { %v1787_v13 = vld [vmem:[#allocation2 + $0x48] sm:$0xff]  ;;  %v2872_v39 = vmul.f32 -1.442695, %v4070_v38  ;;  %v4075_v37 = vadd.f32 %v4067_v32, %v2345_v52  ;;  %v3167_v44 = vpop.f32.mrb[83].mxu1  ;;  %v1961_v24 = vld [vmem:[#allocation2 + $0x30] sm:$0xff] }
 0x18d   : > { %1953 = vst.msk [vmem:[#allocation2 + $0x40] sm:$0xff] %vm817_vm5, %v1943_v45  ;;  %v1944_v18 = vadd.f32 %v1931_v1, %v1787_v13  ;;  %2081 = vst.msk [vmem:[#allocation2 + $0x8] sm:$0xff] %vm817_vm5, %v2071_v46 }
 0x18e   : > { %3272 = vpow2.f32 %v2872_v39  ;;  %v2873_v47 = vmul.f32 -1.442695, %v4075_v37  ;;  %v1962_v4 = vld [vmem:[#allocation2 + $0x38] sm:$0xff] }
 0x18f   : > { %1954 = vst.msk [vmem:[#allocation2 + $0x48] sm:$0xff] %vm817_vm5, %v1944_v18 }
 0x190   : > { %3274 = vpow2.f32 %v2873_v47  ;;  %v2039_v50 = vpop.f32.mrb[84].mxu0 }
 0x191   : > { %v2072_v36 = vadd.f32 %v2039_v50, %v1957_v42  ;;  %v2350_v53 = vpop.f32.mrb[84].mxu1  ;;  %v3148_v54 = vpop.f32.mrb[85].mxu0 }
 0x192   : > { %v4082_v55 = vadd.f32 %v4067_v32, %v2350_v53  ;;  %v3170_v58 = vpop.f32.mrb[85].mxu1  ;;  %v2042_v60 = vpop.f32.mrb[86].mxu0 }
 0x193   : > { %2082 = vst.msk [vmem:[#allocation2 + $0x10] sm:$0xff] %vm817_vm5, %v2072_v36  ;;  %v2073_v63 = vadd.f32 %v2042_v60, %v1958_v59  ;;  %v2353_v43 = vpop.f32.mrb[86].mxu1  ;;  %v3149_v2 = vpop.f32.mrb[87].mxu0 }
 0x194   : > { %v2874_v0 = vmul.f32 -1.442695, %v4082_v55  ;;  %v4087_v23 = vadd.f32 %v4067_v32, %v2353_v43  ;;  %v3171_v3 = vpop.f32.mrb[87].mxu1  ;;  %v1963_v42 = vld [vmem:[#allocation2 + $0x40] sm:$0xff] }
 0x195   : > { %2083 = vst.msk [vmem:[#allocation2 + $0x18] sm:$0xff] %vm817_vm5, %v2073_v63 }
 0x196   : > { %3276 = vpow2.f32 %v2874_v0  ;;  %v2875_v5 = vmul.f32 -1.442695, %v4087_v23  ;;  %v1964_v43 = vld [vmem:[#allocation2 + $0x48] sm:$0xff] }
 0x198   : > { %v3273_v15 = vpop.eup %3272  ;;  %3278 = vpow2.f32 %v2875_v5  ;;  %v2047_v8 = vpop.f32.mrb[88].mxu0 }
 0x199   : > { %v2411_v41 = vadd.f32 1.0, %v3273_v15  ;;  %v2074_v11 = vadd.f32 %v2047_v8, %v1959_v7  ;;  %v2358_v40 = vpop.f32.mrb[88].mxu1  ;;  %v3152_v12 = vpop.f32.mrb[89].mxu0 }
 0x19a   : > { %v3275_v6 = vpop.eup %3274  ;;  %v4092_v48 = vadd.f32 %v4067_v32, %v2358_v40  ;;  %v3174_v14 = vpop.f32.mrb[89].mxu1 }
 0x19b   : > { %v2050_v56 = vpop.f32.mrb[90].mxu0  ;;  %3280 = vrcp.f32 %v2411_v41  ;;  %v2412_v17 = vadd.f32 1.0, %v3275_v6  ;;  %2084 = vst.msk [vmem:[#allocation2 + $0x20] sm:$0xff] %vm817_vm5, %v2074_v11  ;;  %v2361_v49 = vpop.f32.mrb[90].mxu1 }
 0x19c   : > { %v2075_v19 = vadd.f32 %v2050_v56, %v1960_v16  ;;  %v3153_v21 = vpop.f32.mrb[91].mxu0  ;;  %v2876_v57 = vmul.f32 -1.442695, %v4092_v48  ;;  %v4097_v22 = vadd.f32 %v4067_v32, %v2361_v49  ;;  %v3175_v25 = vpop.f32.mrb[91].mxu1 }
 0x19d   : > { %3282 = vrcp.f32 %v2412_v17 }
 0x19e   : > { %2085 = vst.msk [vmem:[#allocation2 + $0x28] sm:$0xff] %vm817_vm5, %v2075_v19  ;;  %3284 = vpow2.f32 %v2876_v57  ;;  %v2877_v62 = vmul.f32 -1.442695, %v4097_v22 }
 0x1a0   : > { %v3277_v10 = vpop.eup %3276  ;;  %3286 = vpow2.f32 %v2877_v62  ;;  %v2055_v1 = vpop.f32.mrb[92].mxu0 }
 0x1a1   : > { %v2413_v26 = vadd.f32 1.0, %v3277_v10  ;;  %v2076_v29 = vadd.f32 %v2055_v1, %v1961_v24  ;;  %v2366_v34 = vpop.f32.mrb[92].mxu1  ;;  %v3156_v30 = vpop.f32.mrb[93].mxu0 }
 0x1a2   : > { %v3279_v61 = vpop.eup %3278  ;;  %v4102_v27 = vadd.f32 %v4067_v32, %v2366_v34  ;;  %v3178_v33 = vpop.f32.mrb[93].mxu1 }
 0x1a3   : > { %v2058_v20 = vpop.f32.mrb[94].mxu0  ;;  %3288 = vrcp.f32 %v2413_v26  ;;  %v2414_v35 = vadd.f32 1.0, %v3279_v61  ;;  %2086 = vst.msk [vmem:[#allocation2 + $0x30] sm:$0xff] %vm817_vm5, %v2076_v29  ;;  %v2369_v51 = vpop.f32.mrb[94].mxu1 }
 0x1a4   : > { %v2077_v28 = vadd.f32 %v2058_v20, %v1962_v4  ;;  %v3157_v31 = vpop.f32.mrb[95].mxu0  ;;  %v2878_v45 = vmul.f32 -1.442695, %v4102_v27  ;;  %v4107_v46 = vadd.f32 %v4067_v32, %v2369_v51  ;;  %v3179_v52 = vpop.f32.mrb[95].mxu1  ;;  %v2850_v4 = vld [vmem:[%s4217_s9] ss:$0 sm:$0xff] }
 0x1a5   : > { %v3281_v9 = vpop.eup %3280  ;;  %3290 = vrcp.f32 %v2414_v35  ;;  %v2090_v20 = vld [vmem:[#allocation2] sm:$0xff]  ;;  %v2091_v35 = vld [vmem:[#allocation2 + $0x8] sm:$0xff]  ;;  %v2092_v31 = vld [vmem:[#allocation2 + $0x10] sm:$0xff] }
 0x1a6   : > { %2087 = vst.msk [vmem:[#allocation2 + $0x38] sm:$0xff] %vm817_vm5, %v2077_v28  ;;  %3292 = vpow2.f32 %v2878_v45  ;;  %v2879_v13 = vmul.f32 -1.442695, %v4107_v46  ;;  %v2441_v18 = vmul.f32 %v3281_v9, %v4070_v38  ;;  %v2107_v28 = vadd.f32 %v2850_v4, %v2090_v20 }
 0x1a7   : > { %v3283_v39 = vpop.eup %3282  ;;  %v4131_v52 = vadd.f32 %v2850_v4, %v2092_v31 }
 0x1a8   : > { %v3285_v44 = vpop.eup %3284  ;;  %v2442_v47 = vmul.f32 %v3283_v39, %v4075_v37  ;;  %3294 = vpow2.f32 %v2879_v13  ;;  %v2063_v50 = vpop.f32.mrb[96].mxu0  ;;  %v2851_v51 = vmul.f32 -1.442695, %v2107_v28  ;;  %v2094_v39 = vld [vmem:[#allocation2 + $0x20] sm:$0xff] }
 0x1a9   : > { %v2415_v36 = vadd.f32 1.0, %v3285_v44  ;;  %v2078_v53 = vadd.f32 %v2063_v50, %v1963_v42  ;;  %v2374_v54 = vpop.f32.mrb[96].mxu1  ;;  %v3160_v58 = vpop.f32.mrb[97].mxu0  ;;  %v2853_v13 = vmul.f32 -1.442695, %v4131_v52 }
 0x1aa   : > { %v3287_v59 = vpop.eup %3286  ;;  %v2375_v60 = vadd.f32 %v4067_v32, %v2374_v54  ;;  %v3182_v63 = vpop.f32.mrb[97].mxu1  ;;  %v3213_v0 = vpack.i.bf16 %v2442_v47, %v2441_v18  ;;  %v2095_v18 = vld [vmem:[#allocation2 + $0x28] sm:$0xff]  ;;  %v4137_v47 = vadd.f32 %v2850_v4, %v2094_v39 }
 0x1ab   : > { %v2066_v2 = vpop.f32.mrb[98].mxu0  ;;  %3296 = vrcp.f32 %v2415_v36  ;;  %v2416_v3 = vadd.f32 1.0, %v3287_v59  ;;  %2088 = vst.msk [vmem:[#allocation2 + $0x40] sm:$0xff] %vm817_vm5, %v2078_v53  ;;  %v2377_v37 = vpop.f32.mrb[98].mxu1  ;;  %v4139_v50 = vadd.f32 %v2850_v4, %v2095_v18  ;;  %v2096_v59 = vld [vmem:[#allocation2 + $0x30] sm:$0xff] }
 0x1ac   : > { %v2079_v38 = vadd.f32 %v2066_v2, %v1964_v43  ;;  %v3161_v5 = vpop.f32.mrb[99].mxu0  ;;  %v2880_v15 = vmul.f32 -1.442695, %v2375_v60  ;;  %v2378_v7 = vadd.f32 %v4067_v32, %v2377_v37  ;;  %3214 = vrot.lane.b32.xlu0 %v3213_v0, %s3378_s15  ;;  %v3183_v8 = vpop.f32.mrb[99].mxu1  ;;  %v2855_v36 = vmul.f32 -1.442695, %v4137_v47 }
 0x1ad   : > { %v3289_v41 = vpop.eup %3288  ;;  %3298 = vrcp.f32 %v2416_v3  ;;  %v2856_v58 = vmul.f32 -1.442695, %v4139_v50  ;;  %v2097_v63 = vld [vmem:[#allocation2 + $0x38] sm:$0xff]  ;;  %v4143_v2 = vadd.f32 %v2850_v4, %v2096_v59 }
 0x1ae   : > { %2089 = vst.msk [vmem:[#allocation2 + $0x48] sm:$0xff] %vm817_vm5, %v2079_v38  ;;  %3300 = vpow2.f32 %v2880_v15  ;;  %v2881_v11 = vmul.f32 -1.442695, %v2378_v7  ;;  %v2443_v6 = vmul.f32 %v3289_v41, %v4082_v55  ;;  %v4145_v0 = vadd.f32 %v2850_v4, %v2097_v63 }
 0x1af   : > { %v3291_v40 = vpop.eup %3290  ;;  %v2857_v37 = vmul.f32 -1.442695, %v4143_v2 }
 0x1b0   : > { %v3293_v12 = vpop.eup %3292  ;;  %v2444_v14 = vmul.f32 %v3291_v40, %v4087_v23  ;;  %3302 = vpow2.f32 %v2881_v11  ;;  %v2858_v5 = vmul.f32 -1.442695, %v4145_v0 }
 0x1b1   : > { %v2417_v16 = vadd.f32 1.0, %v3293_v12 }
 0x1b2   : > { %v3295_v56 = vpop.eup %3294  ;;  %v3218_v32 = vpack.i.bf16 %v2444_v14, %v2443_v6  ;;  %v2098_v15 = vld [vmem:[#allocation2 + $0x40] sm:$0xff] }
 0x1b3   : > { %3304 = vrcp.f32 %v2417_v16  ;;  %v2418_v17 = vadd.f32 1.0, %v3295_v56  ;;  %v4149_v11 = vadd.f32 %v2850_v4, %v2098_v15 }
 0x1b4   : > { %3219 = vrot.lane.b32.xlu0 %v3218_v32, %s3378_s15 }
 0x1b5   : > { %v3297_v19 = vpop.eup %3296  ;;  %3306 = vrcp.f32 %v2418_v17  ;;  %v2099_v8 = vld [vmem:[#allocation2 + $0x48] sm:$0xff]  ;;  %v2859_v56 = vmul.f32 -1.442695, %v4149_v11 }
 0x1b6   : > { %v2445_v57 = vmul.f32 %v3297_v19, %v4092_v48  ;;  %v4151_v40 = vadd.f32 %v2850_v4, %v2099_v8 }
 0x1b7   : > { %v3299_v49 = vpop.eup %3298 }
 0x1b8   : > { %v3301_v21 = vpop.eup %3300  ;;  %v2446_v25 = vmul.f32 %v3299_v49, %v4097_v22  ;;  %v2860_v32 = vmul.f32 -1.442695, %v4151_v40 }
 0x1b9   : > { %v2419_v62 = vadd.f32 1.0, %v3301_v21 }
 0x1ba   : > { %v3303_v55 = vpop.eup %3302  ;;  %v3223_v10 = vpack.i.bf16 %v2446_v25, %v2445_v57 }
 0x1bb   : > { %3308 = vrcp.f32 %v2419_v62  ;;  %v2420_v23 = vadd.f32 1.0, %v3303_v55 }
 0x1bc   : > { %3224 = vrot.lane.b32.xlu1 %v3223_v10, %s3378_s15 }
 0x1bd   : > { %v3305_v24 = vpop.eup %3304  ;;  %3310 = vrcp.f32 %v2420_v23 }
 0x1be   : > { %v2447_v26 = vmul.f32 %v3305_v24, %v4102_v27  ;;  %v2108_v27 = vadd.f32 %v2850_v4, %v2091_v35  ;;  %3312 = vpow2.f32 %v2851_v51 }
 0x1bf   : > { %v3307_v1 = vpop.eup %3306 }
 0x1c0   : > { %v2448_v29 = vmul.f32 %v3307_v1, %v4107_v46  ;;  %v2852_v45 = vmul.f32 -1.442695, %v2108_v27  ;;  %v2093_v46 = vld [vmem:[#allocation2 + $0x18] sm:$0xff] }
 0x1c1   : > { %v4133_v9 = vadd.f32 %v2850_v4, %v2093_v46 }
 0x1c2   : > { %v3228_v34 = vpack.i.bf16 %v2448_v29, %v2447_v26  ;;  %3314 = vpow2.f32 %v2852_v45 }
 0x1c3   : > { %v2854_v44 = vmul.f32 -1.442695, %v4133_v9  ;;  %3316 = vpow2.f32 %v2853_v13 }
 0x1c4   : > { %3229 = vrot.lane.b32.xlu1 %v3228_v34, %s3378_s15 }
 0x1c5   : > { %v3309_v48 = vpop.eup %3308  ;;  %3318 = vpow2.f32 %v2854_v44 }
 0x1c6   : > { %v2449_v22 = vmul.f32 %v3309_v48, %v2375_v60  ;;  %3320 = vpow2.f32 %v2855_v36 }
 0x1c7   : > { %v3311_v30 = vpop.eup %3310 }
 0x1c8   : > { %v2450_v61 = vmul.f32 %v3311_v30, %v2378_v7  ;;  %v3313_v42 = vpop.eup %3312 }
 0x1c9   : > { %v2147_v54 = vadd.f32 1.0, %v3313_v42 }
 0x1ca   : > { %v3233_v33 = vpack.i.bf16 %v2450_v61, %v2449_v22 }
 0x1cb   : > { %3322 = vrcp.f32 %v2147_v54 }
 0x1cc   : > { %3234 = vrot.lane.b32.xlu0 %v3233_v33, %s3378_s15  ;;  %v3315_v53 = vpop.eup %3314  ;;  %3324 = vpow2.f32 %v2856_v58 }
 0x1cd   : > { %v2148_v60 = vadd.f32 1.0, %v3315_v53  ;;  %v3317_v43 = vpop.eup %3316 }
 0x1ce   : > { %v2149_v38 = vadd.f32 1.0, %v3317_v43 }
 0x1cf   : > { %3326 = vrcp.f32 %v2148_v60  ;;  %v3319_v3 = vpop.eup %3318 }
 0x1d0   : > { %v2150_v7 = vadd.f32 1.0, %v3319_v3  ;;  %3328 = vrcp.f32 %v2149_v38  ;;  %v3321_v41 = vpop.eup %3320 }
 0x1d1   : > { %3330 = vpow2.f32 %v2857_v37  ;;  %v2151_v14 = vadd.f32 1.0, %v3321_v41 }
 0x1d2   : > { %3332 = vpow2.f32 %v2858_v5 }
 0x1d3   : > { %3334 = vrcp.f32 %v2150_v7 }
 0x1d4   : > { %3336 = vrcp.f32 %v2151_v14 }
 0x1d5   : > { %v3323_v12 = vpop.eup %3322  ;;  %3338 = vpow2.f32 %v2859_v56 }
 0x1d6   : > { %v3325_v6 = vpop.eup %3324  ;;  %v2177_v19 = vmul.f32 %v3323_v12, %v2107_v28  ;;  %3340 = vpow2.f32 %v2860_v32 }
 0x1d7   : > { %v2152_v49 = vadd.f32 1.0, %v3325_v6 }
 0x1d9   : > { %v3327_v16 = vpop.eup %3326  ;;  %3342 = vrcp.f32 %v2152_v49 }
 0x1da   : > { %v2178_v25 = vmul.f32 %v3327_v16, %v2108_v27  ;;  %v3329_v62 = vpop.eup %3328 }
 0x1db   : > { %v3331_v23 = vpop.eup %3330  ;;  %v2179_v33 = vmul.f32 %v3329_v62, %v4131_v52 }
 0x1dc   : > { %v3333_v26 = vpop.eup %3332  ;;  %v2153_v34 = vadd.f32 1.0, %v3331_v23 }
 0x1dd   : > { %v3335_v29 = vpop.eup %3334  ;;  %v2154_v30 = vadd.f32 1.0, %v3333_v26 }
 0x1de   : > { %v2180_v4 = vmul.f32 %v3335_v29, %v4133_v9  ;;  %v3337_v20 = vpop.eup %3336  ;;  %3344 = vrcp.f32 %v2153_v34 }
 0x1df   : > { %v3339_v27 = vpop.eup %3338  ;;  %3346 = vrcp.f32 %v2154_v30  ;;  %v2181_v18 = vmul.f32 %v3337_v20, %v4137_v47 }
 0x1e0   : > { %v3341_v45 = vpop.eup %3340  ;;  %v2155_v52 = vadd.f32 1.0, %v3339_v27 }
 0x1e1   : > { %v2156_v13 = vadd.f32 1.0, %v3341_v45 }
 0x1e2   : > { %3348 = vrcp.f32 %v2155_v52 }
 0x1e3   : > { %v3343_v46 = vpop.eup %3342  ;;  %3350 = vrcp.f32 %v2156_v13 }
 0x1e4   : > { %v2182_v42 = vmul.f32 %v3343_v46, %v4139_v50 }
 0x1e8   : > { %v3345_v59 = vpop.eup %3344 }
 0x1e9   : > { %v3347_v60 = vpop.eup %3346  ;;  %v2183_v50 = vmul.f32 %v3345_v59, %v4143_v2 }
 0x1ea   : > { %v2184_v3 = vmul.f32 %v3347_v60, %v4145_v0 }
 0x1ec   : > { %v3349_v7 = vpop.eup %3348 }
 0x1ed   : > { %v3351_v8 = vpop.eup %3350  ;;  %v2185_v2 = vmul.f32 %v3349_v7, %v4149_v11 }
 0x1ee   : > { %v2186_v0 = vmul.f32 %v3351_v8, %v4151_v40 }
 0x21e   : > { %v3215_v17 = vpop.permute.xlu0 %3214 }
 0x21f   : > { %v3217_v21 = vunpack.i.h.bf16 %v3215_v17  ;;  %v3216_v57 = vunpack.i.l.bf16 %v3215_v17 }
 0x221   : > { %v2491_v55 = vsel %vm817_vm5, %v2177_v19, %v3216_v57  ;;  %v2492_v10 = vsel %vm817_vm5, %v2178_v25, %v3217_v21 }
 0x222   : > { %v2894_v24 = vpack.c.bf16 %v2491_v55, %v2491_v55  ;;  %v2895_v1 = vpack.c.bf16 %v2492_v10, %v2492_v10 }
 0x224   : > { %2542 = vst.msk [vmem:[%s4159_s17] sm:$0xf] %vm2541_vm6, %v2894_v24  ;;  %2543 = vst.msk [vmem:[%s4159_s17 + $0x4] sm:$0xf] %vm2541_vm6, %v2895_v1 }
 0x226   : > { %v3220_v48 = vpop.permute.xlu0 %3219 }
 0x227   : > { %v3222_v22 = vunpack.i.h.bf16 %v3220_v48  ;;  %v3221_v61 = vunpack.i.l.bf16 %v3220_v48 }
 0x229   : > { %v2493_v35 = vsel %vm817_vm5, %v2179_v33, %v3221_v61  ;;  %v2494_v28 = vsel %vm817_vm5, %v2180_v4, %v3222_v22 }
 0x22a   : > { %v2896_v51 = vpack.c.bf16 %v2493_v35, %v2493_v35  ;;  %v2897_v31 = vpack.c.bf16 %v2494_v28, %v2494_v28 }
 0x22c   : > { %2544 = vst.msk [vmem:[%s4159_s17 + $0x8] sm:$0xf] %vm2541_vm6, %v2896_v51  ;;  %2545 = vst.msk [vmem:[%s4159_s17 + $0xc] sm:$0xf] %vm2541_vm6, %v2897_v31 }
 0x22e   : > { %v3225_v9 = vpop.permute.xlu1 %3224 }
 0x22f   : > { %v3227_v39 = vunpack.i.h.bf16 %v3225_v9  ;;  %v3226_v44 = vunpack.i.l.bf16 %v3225_v9 }
 0x231   : > { %v2495_v36 = vsel %vm817_vm5, %v2181_v18, %v3226_v44  ;;  %v2496_v53 = vsel %vm817_vm5, %v2182_v42, %v3227_v39 }
 0x232   : > { %v2898_v54 = vpack.c.bf16 %v2495_v36, %v2495_v36  ;;  %v2899_v58 = vpack.c.bf16 %v2496_v53, %v2496_v53 }
 0x234   : > { %2546 = vst.msk [vmem:[%s4159_s17 + $0x10] sm:$0xf] %vm2541_vm6, %v2898_v54  ;;  %2547 = vst.msk [vmem:[%s4159_s17 + $0x14] sm:$0xf] %vm2541_vm6, %v2899_v58 }
 0x236   : > { %v3230_v63 = vpop.permute.xlu1 %3229 }
 0x237   : > { %v3232_v47 = vunpack.i.h.bf16 %v3230_v63  ;;  %v3231_v43 = vunpack.i.l.bf16 %v3230_v63 }
 0x239   : > { %v2497_v38 = vsel %vm817_vm5, %v2183_v50, %v3231_v43  ;;  %v2498_v37 = vsel %vm817_vm5, %v2184_v3, %v3232_v47 }
 0x23a   : > { %v2900_v5 = vpack.c.bf16 %v2497_v38, %v2497_v38  ;;  %v2901_v15 = vpack.c.bf16 %v2498_v37, %v2498_v37 }
 0x23c   : > { %2548 = vst.msk [vmem:[%s4159_s17 + $0x18] sm:$0xf] %vm2541_vm6, %v2900_v5  ;;  %2549 = vst.msk [vmem:[%s4159_s17 + $0x1c] sm:$0xf] %vm2541_vm6, %v2901_v15 }
 0x23e   : > { %v3235_v41 = vpop.permute.xlu0 %3234 }
 0x23f   : > { %v3237_v12 = vunpack.i.h.bf16 %v3235_v41  ;;  %v3236_v6 = vunpack.i.l.bf16 %v3235_v41 }
 0x241   : > { %v2499_v14 = vsel %vm817_vm5, %v2185_v2, %v3236_v6  ;;  %v2500_v16 = vsel %vm817_vm5, %v2186_v0, %v3237_v12 }
 0x242   : > { %v2902_v56 = vpack.c.bf16 %v2499_v14, %v2499_v14  ;;  %v2903_v32 = vpack.c.bf16 %v2500_v16, %v2500_v16 }
 0x244   : > { %2550 = vst.msk [vmem:[%s4159_s17 + $0x20] sm:$0xf] %vm2541_vm6, %v2902_v56  ;;  %2551 = vst.msk [vmem:[%s4159_s17 + $0x24] sm:$0xf] %vm2541_vm6, %v2903_v32 }
 0x245 PF: > { %s22_s23 = sadd.s32 1, %s3374_s23   ;;  %s4221_s21 = smov %s3370_s22 }
 0x246   : > { %p19_p5 = scmp.ge.s32.totalorder %s22_s23, 4   ;;  %s4222_s22 = smov %s4224_s24 }
 0x248   :  { %21 = sbr.rel (!%p19_p5) target bundleno = 2 (0x2), region = 131 }

</bundles_post_ra>
